<compile_context>
chip_gen: v6e
topology: v6e:2x2x1
jax: 0.10.0
libtpu: 0.0.40
codegen_flags: <defaults>
</compile_context>

<pallas_src>
import functools

import jax
import jax.numpy as jnp
from jax.experimental import pallas as pl
from jax.experimental.pallas import tpu as pltpu


def _octave_kernel(xh_ref, xlo_ref, whi_ref, wlo_ref, yh_ref, yl_ref):
    """One (batch, row-tile) block of OctaveConv (all four convs + upsample).

    xh_ref  : (TH+2, W2+1, 2*c_h_in)  zero-padded X_h rows of this tile, NHWC
                                      with even/odd W columns folded onto the
                                      lane axis: xh[i,t,r*C+c] == xh_pad[i,2t+r,c].
    xlo_ref : (TL+2, W2+2, c_lo_in)   zero-padded low-res rows, NHWC, channels
                                      = [X_l || avgpool2x2(X_h)].
    whi_ref : (12*c_h_in, 2*c_h_out)  phase-blocked h2h weights
                                      (K ordered (dy,t,r,ci); N = [q=0 || q=1]).
    wlo_ref : (9*c_lo_in, 2*c_h_out+c_l_out) tap-folded low-branch weights
                                      (N = [l2h(q=0) || l2h(q=1) || l2l+h2l]).
    yh_ref  : (TH, W2, 2*c_h_out)     phase-blocked Y_h: yh[i,b,q*C+o]==Y_h[i,2b+q,o].
    yl_ref  : (TL, W2, c_l_out)       Y_l, NHWC.
    """
    th, w2, oh2 = yh_ref.shape
    tl = th // 2
    f32 = jnp.float32
    hi = jax.lax.Precision.HIGHEST

    # ---- low branch: ONE im2col + ONE MXU dot yields l2l(x_l)+h2l(pool(x_h))
    #      (-> Y_l) and l2h(x_l) duplicated for both output W-phases.
    cols_lo = jnp.concatenate(
        [xlo_ref[dy:dy + tl, dx:dx + w2, :]
         for dy in range(3) for dx in range(3)], axis=-1)      # (TL, W2, 9*c_lo_in)
    out_lo = jnp.dot(cols_lo.reshape(tl * w2, -1), wlo_ref[...],
                     preferred_element_type=f32, precision=hi
                     ).reshape(tl, w2, -1)
    yl_ref[...] = out_lo[..., oh2:].astype(yl_ref.dtype)
    l2h = out_lo[..., :oh2].reshape(tl, 1, w2, oh2)            # phase-duplicated l2h

    # ---- high branch: both W-phases share the same im2col (full-lane slices
    #      of the W-folded input -> no unaligned lane slicing) and come out of
    #      ONE dot against the phase-concatenated weights.
    cols_hi = jnp.concatenate(
        [xh_ref[dy:dy + th, t:t + w2, :]
         for dy in range(3) for t in range(2)], axis=-1)       # (TH, W2, 12*c_h_in)
    h2h = jnp.dot(cols_hi.reshape(th * w2, -1), whi_ref[...],
                  preferred_element_type=f32, precision=hi
                  ).reshape(tl, 2, w2, oh2)

    # Nearest 2x upsample of l2h: W handled by the phase-blocked channel layout,
    # H by broadcasting over the row-pair axis (no materialized upsample).
    yh_ref[...] = (h2h + l2h).reshape(th, w2, oh2).astype(yh_ref.dtype)


# ----------------------------- wrapper helpers -------------------------------
def _tap_major(w):
    """Conv2d OIHW weight -> tap-major (9, cin, cout)."""
    return jnp.transpose(w, (2, 3, 1, 0)).reshape(9, w.shape[1], w.shape[0])


def _pack_low_weights(wl2l, wl2h, wh2l, dtype):
    """(9*(c_l_in+c_h_in), 2*c_h_out+c_l_out) matrix for the combined low dot."""
    c_h_out, c_h_in = wl2h.shape[0], wh2l.shape[1]
    wl2l_t, wl2h_t, wh2l_t = _tap_major(wl2l), _tap_major(wl2h), _tap_major(wh2l)
    zeros = jnp.zeros((9, c_h_in, c_h_out), wl2h_t.dtype)
    # rows: [X_l channels || pooled X_h channels];  cols: [l2h(q0) || l2h(q1) || Y_l]
    w_xl = jnp.concatenate([wl2h_t, wl2h_t, wl2l_t], axis=2)
    w_xp = jnp.concatenate([zeros, zeros, wh2l_t], axis=2)
    w = jnp.concatenate([w_xl, w_xp], axis=1)
    return w.reshape(w.shape[0] * w.shape[1], w.shape[2]).astype(dtype)


def _pack_high_weights(wh2h, dtype):
    """(12*c_h_in, 2*c_h_out) phase-blocked h2h weights for the W-folded im2col."""
    c_h_out, c_h_in = wh2h.shape[:2]
    wt = jnp.transpose(wh2h, (2, 3, 1, 0))                     # [dy, dx, ci, co]
    zero = jnp.zeros((c_h_in, c_h_out), wt.dtype)
    rows = []
    for dy in range(3):
        for t in range(2):
            for r in range(2):
                cols = []
                for q in range(2):
                    dx = 2 * t + r - q
                    cols.append(wt[dy, dx] if 0 <= dx <= 2 else zero)
                rows.append(jnp.concatenate(cols, axis=1))     # (ci, 2*c_h_out)
    return jnp.concatenate(rows, axis=0).astype(dtype)


def _ru(x, m):
    return -(-x // m) * m


def _tile_vmem_bytes(th, w2, c_h_in, c_lo_in, c_h_out, c_l_out, itemsize):
    """Rough per-grid-step VMEM footprint (lane/sublane padded), in bytes."""
    tl = th // 2
    oh2 = 2 * c_h_out
    o_lo = oh2 + c_l_out
    tile = lambda d0, d1, d2, isz: d0 * _ru(d1, 8) * _ru(d2, 128) * isz
    b = 0
    # double-buffered pipeline inputs / outputs / weights
    b += 2 * tile(th + 2, w2 + 1, 2 * c_h_in, itemsize)
    b += 2 * tile(tl + 2, w2 + 2, c_lo_in, itemsize)
    b += 2 * tile(1, 12 * c_h_in, oh2, itemsize)
    b += 2 * tile(1, 9 * c_lo_in, o_lo, itemsize)
    b += 2 * tile(th, w2, oh2, itemsize)
    b += 2 * tile(tl, w2, c_l_out, itemsize)
    # f32 in-kernel temporaries: im2col slabs + matmul results (x2 slack)
    b += 2 * tile(1, th * w2, 12 * c_h_in, 4)
    b += 2 * tile(1, tl * w2, 9 * c_lo_in, 4)
    b += 2 * tile(1, th * w2, oh2, 4)
    b += 2 * tile(1, tl * w2, o_lo, 4)
    return b


def octave_conv(x_h, x_l, wh2h, wl2h, wl2l, wh2l, *, row_tile=None):
    """Pallas OctaveConv forward.  x_h/x_l are NCHW; returns NCHW (y_h, y_l).

    Callers on v6e/v7x may pass bf16 activations/weights (accumulation stays
    f32 in-kernel and outputs are stored in the input dtype).
    """
    n, c_h_in, h, w = x_h.shape
    _, c_l_in, h2, w2 = x_l.shape
    assert h == 2 * h2 and w == 2 * w2, "X_l must be the 2x-downsampled branch"
    c_h_out, c_l_out = wh2h.shape[0], wl2l.shape[0]
    assert min(c_h_in, c_l_in, c_h_out, c_l_out) > 0, "zero-channel branch"
    assert w2 % 8 == 0, "W/2 must be a multiple of 8 (TPU sublane tile)"

    dtype = x_h.dtype
    itemsize = jnp.dtype(dtype).itemsize
    c_lo_in = c_l_in + c_h_in
    oh2 = 2 * c_h_out

    # ---- row tiling: keeps per-step VMEM small (v7x has 64 MiB / TC) and
    #      gives both v7x TensorCores work even at batch=1. ------------------
    if row_tile is None:
        row_tile = h
        while (_tile_vmem_bytes(row_tile, w2, c_h_in, c_lo_in, c_h_out,
                                c_l_out, itemsize) > (20 << 20)
               and row_tile % 4 == 0):
            row_tile //= 2
    th = int(row_tile)
    assert th % 2 == 0 and h % th == 0, "row_tile must be even and divide H"
    tl = th // 2
    n_t = h // th

    # ---- glue (plain JAX): pool, NCHW->NHWC, pad, W-fold, halo row-tiles ----
    x_hp = x_h.reshape(n, c_h_in, h2, 2, w2, 2).mean(axis=(3, 5))
    to_nhwc = lambda t: jnp.transpose(t, (0, 2, 3, 1))
    # Combined low-res input: channels = [X_l || avgpool2x2(X_h)], zero padded.
    x_lo = jnp.pad(jnp.concatenate([to_nhwc(x_l), to_nhwc(x_hp)], axis=-1),
                   ((0, 0), (1, 1), (1, 1), (0, 0)))
    # Padded X_h with even/odd W columns folded onto the lane axis (free reshape).
    xh_fold = jnp.pad(to_nhwc(x_h), ((0, 0), (1, 1), (1, 1), (0, 0))
                      ).reshape(n, h + 2, w2 + 1, 2 * c_h_in)

    if n_t == 1:
        xh_t = xh_fold[:, None]
        xlo_t = x_lo[:, None]
    else:
        # Materialize per-tile row windows (2-row / 2-low-row halo) so plain
        # non-overlapping BlockSpec blocks can tile the rows.
        xh_t = jnp.stack([xh_fold[:, j * th:j * th + th + 2]
                          for j in range(n_t)], axis=1)
        xlo_t = jnp.stack([x_lo[:, j * tl:j * tl + tl + 2]
                           for j in range(n_t)], axis=1)

    w_high = _pack_high_weights(wh2h, dtype)             # (12*c_h_in, 2*c_h_out)
    w_low = _pack_low_weights(wl2l, wl2h, wh2l, dtype)   # (9*c_lo_in, 2*c_h_out+c_l_out)

    tile_spec = lambda shape: pl.BlockSpec(
        (None, None) + tuple(shape), lambda b, j: (b, j, 0, 0, 0))
    full_spec = lambda shape: pl.BlockSpec(tuple(shape), lambda b, j: (0, 0))

    vmem_est = _tile_vmem_bytes(th, w2, c_h_in, c_lo_in, c_h_out, c_l_out,
                                itemsize)
    vmem_limit = int(min(96 << 20, max(32 << 20, 2 * vmem_est + (8 << 20))))

    flops = 2 * n * (h * w2 * 12 * c_h_in * oh2
                     + h2 * w2 * 9 * c_lo_in * (oh2 + c_l_out))
    bytes_accessed = int(
        (xh_t.size + xlo_t.size + w_high.size + w_low.size) * itemsize
        + (n * h * w2 * oh2 + n * h2 * w2 * c_l_out) * itemsize)

    yh_ph, yl_nhwc = pl.pallas_call(
        _octave_kernel,
        out_shape=(
            jax.ShapeDtypeStruct((n, n_t, th, w2, oh2), dtype),
            jax.ShapeDtypeStruct((n, n_t, tl, w2, c_l_out), dtype),
        ),
        grid=(n, n_t),
        in_specs=[
            tile_spec((th + 2, w2 + 1, 2 * c_h_in)),     # W-folded padded X_h tile
            tile_spec((tl + 2, w2 + 2, c_lo_in)),        # combined low-res tile
            full_spec((12 * c_h_in, oh2)),               # packed h2h weights
            full_spec((9 * c_lo_in, oh2 + c_l_out)),     # packed low-branch weights
        ],
        out_specs=(
            tile_spec((th, w2, oh2)),                    # phase-blocked Y_h
            tile_spec((tl, w2, c_l_out)),                # Y_l (NHWC)
        ),
        compiler_params=pltpu.CompilerParams(
            dimension_semantics=("parallel", "parallel"),
            vmem_limit_bytes=vmem_limit),
        cost_estimate=pl.CostEstimate(
            flops=flops, transcendentals=0, bytes_accessed=bytes_accessed),
    )(xh_t, xlo_t, w_high, w_low)

    # ---- single output layout transpose back to NCHW ------------------------
    y_h = yh_ph.reshape(n, h, w2, 2, c_h_out).transpose(0, 4, 1, 2, 3
                                                        ).reshape(n, c_h_out, h, w)
    y_l = yl_nhwc.reshape(n, h2, w2, c_l_out).transpose(0, 3, 1, 2)
    return y_h, y_l


# ------------------------------- reference ----------------------------------
def _conv_ref(x, w):
    return jax.lax.conv_general_dilated(
        x, w, window_strides=(1, 1), padding=((1, 1), (1, 1)),
        dimension_numbers=("NCHW", "OIHW", "NCHW"),
        precision=jax.lax.Precision.HIGHEST)


def octave_conv_ref(x_h, x_l, wh2h, wl2h, wl2l, wh2l):
    n, c, h, w = x_h.shape
    x_hp = x_h.reshape(n, c, h // 2, 2, w // 2, 2).mean(axis=(3, 5))
    x_h2h = _conv_ref(x_h, wh2h)
    x_l2h = _conv_ref(x_l, wl2h)
    x_l2l = _conv_ref(x_l, wl2l)
    x_h2l = _conv_ref(x_hp, wh2l)
    x_l2h_up = jnp.repeat(jnp.repeat(x_l2h, 2, axis=2), 2, axis=3)
    return x_l2h_up + x_h2h, x_h2l + x_l2l


if __name__ == "__main__":
    key = jax.random.PRNGKey(0)
    k = jax.random.split(key, 6)

    # OctaveConv(in_ch=4, out_ch=4, kernel_size=(3,3), alpha=0.5, padding=1)
    N, IN_CH, OUT_CH, H, W = 2, 4, 4, 16, 16
    alpha = 0.5
    c_l_in = int(alpha * IN_CH)
    c_h_in = IN_CH - c_l_in
    c_l_out = int(alpha * OUT_CH)
    c_h_out = OUT_CH - c_l_out

    x_h = jax.random.normal(k[0], (N, c_h_in, H, W), jnp.float32)
    x_l = jax.random.normal(k[1], (N, c_l_in, H // 2, W // 2), jnp.float32)
    # deterministic synthetic weights (Conv2d OIHW, bias=False)
    wh2h = 0.1 * jax.random.normal(k[2], (c_h_out, c_h_in, 3, 3), jnp.float32)
    wl2h = 0.1 * jax.random.normal(k[3], (c_h_out, c_l_in, 3, 3), jnp.float32)
    wl2l = 0.1 * jax.random.normal(k[4], (c_l_out, c_l_in, 3, 3), jnp.float32)
    wh2l = 0.1 * jax.random.normal(k[5], (c_l_out, c_h_in, 3, 3), jnp.float32)

    # row_tile=8 exercises the halo'd row-tiling path (grid = (batch, 2)).
    run = jax.jit(functools.partial(octave_conv, row_tile=8))
    y_h, y_l = run(x_h, x_l, wh2h, wl2h, wl2l, wh2l)
    jax.block_until_ready((y_h, y_l))

    r_h, r_l = octave_conv_ref(x_h, x_l, wh2h, wl2h, wl2l, wh2l)
    assert y_h.shape == r_h.shape and y_l.shape == r_l.shape
    assert bool(jnp.allclose(y_h, r_h, atol=1e-3, rtol=1e-3)), \
        float(jnp.max(jnp.abs(y_h - r_h)))
    assert bool(jnp.allclose(y_l, r_l, atol=1e-3, rtol=1e-3)), \
        float(jnp.max(jnp.abs(y_l - r_l)))
    print("KERNEL_OK")
</pallas_src>

<mosaic_0001>
module attributes {stable_mosaic.version = 11 : i64} {
  func.func @_octave_kernel(%arg0: i32, %arg1: i32, %arg2: memref<1x1x10x9x4xf32, #tpu.memory_space<vmem>>, %arg3: memref<1x1x6x10x4xf32, #tpu.memory_space<vmem>>, %arg4: memref<24x4xf32, #tpu.memory_space<vmem>>, %arg5: memref<36x6xf32, #tpu.memory_space<vmem>>, %arg6: memref<1x1x8x8x4xf32, #tpu.memory_space<vmem>>, %arg7: memref<1x1x4x8x2xf32, #tpu.memory_space<vmem>>) attributes {dimension_semantics = [#tpu.dimension_semantics<parallel>, #tpu.dimension_semantics<parallel>], iteration_bounds = array<i64: 2, 2>, scalar_prefetch = 0 : i64, scratch_operands = 0 : i64, tpu.core_type = #tpu.core_type<tc>, window_params = [{transform_indices = @transform_0, window_bounds = array<i64: 1, 1, 10, 9, 4>}, {transform_indices = @transform_1, window_bounds = array<i64: 1, 1, 6, 10, 4>}, {pipeline_mode = #tpu.pipeline_mode<synchronous>, transform_indices = @transform_2, window_bounds = array<i64: 24, 4>}, {pipeline_mode = #tpu.pipeline_mode<synchronous>, transform_indices = @transform_3, window_bounds = array<i64: 36, 6>}, {transform_indices = @transform_4, window_bounds = array<i64: 1, 1, 8, 8, 4>}, {transform_indices = @transform_5, window_bounds = array<i64: 1, 1, 4, 8, 2>}]} {
    %c0 = arith.constant 0 : index
    %c0_0 = arith.constant 0 : index
    %c0_1 = arith.constant 0 : index
    %c0_2 = arith.constant 0 : index
    %c0_3 = arith.constant 0 : index
    %0 = vector.load %arg3[%c0, %c0_0, %c0_1, %c0_2, %c0_3] : memref<1x1x6x10x4xf32, #tpu.memory_space<vmem>>, vector<1x1x4x8x4xf32>
    %1 = vector.shape_cast %0 : vector<1x1x4x8x4xf32> to vector<4x8x4xf32>
    %c0_4 = arith.constant 0 : index
    %c0_5 = arith.constant 0 : index
    %c0_6 = arith.constant 0 : index
    %c1 = arith.constant 1 : index
    %c0_7 = arith.constant 0 : index
    %2 = vector.load %arg3[%c0_4, %c0_5, %c0_6, %c1, %c0_7] : memref<1x1x6x10x4xf32, #tpu.memory_space<vmem>>, vector<1x1x4x8x4xf32>
    %3 = vector.shape_cast %2 : vector<1x1x4x8x4xf32> to vector<4x8x4xf32>
    %c0_8 = arith.constant 0 : index
    %c0_9 = arith.constant 0 : index
    %c0_10 = arith.constant 0 : index
    %c2 = arith.constant 2 : index
    %c0_11 = arith.constant 0 : index
    %4 = vector.load %arg3[%c0_8, %c0_9, %c0_10, %c2, %c0_11] : memref<1x1x6x10x4xf32, #tpu.memory_space<vmem>>, vector<1x1x4x8x4xf32>
    %5 = vector.shape_cast %4 : vector<1x1x4x8x4xf32> to vector<4x8x4xf32>
    %c0_12 = arith.constant 0 : index
    %c0_13 = arith.constant 0 : index
    %c1_14 = arith.constant 1 : index
    %c0_15 = arith.constant 0 : index
    %c0_16 = arith.constant 0 : index
    %6 = vector.load %arg3[%c0_12, %c0_13, %c1_14, %c0_15, %c0_16] : memref<1x1x6x10x4xf32, #tpu.memory_space<vmem>>, vector<1x1x4x8x4xf32>
    %7 = vector.shape_cast %6 : vector<1x1x4x8x4xf32> to vector<4x8x4xf32>
    %c0_17 = arith.constant 0 : index
    %c0_18 = arith.constant 0 : index
    %c1_19 = arith.constant 1 : index
    %c1_20 = arith.constant 1 : index
    %c0_21 = arith.constant 0 : index
    %8 = vector.load %arg3[%c0_17, %c0_18, %c1_19, %c1_20, %c0_21] : memref<1x1x6x10x4xf32, #tpu.memory_space<vmem>>, vector<1x1x4x8x4xf32>
    %9 = vector.shape_cast %8 : vector<1x1x4x8x4xf32> to vector<4x8x4xf32>
    %c0_22 = arith.constant 0 : index
    %c0_23 = arith.constant 0 : index
    %c1_24 = arith.constant 1 : index
    %c2_25 = arith.constant 2 : index
    %c0_26 = arith.constant 0 : index
    %10 = vector.load %arg3[%c0_22, %c0_23, %c1_24, %c2_25, %c0_26] : memref<1x1x6x10x4xf32, #tpu.memory_space<vmem>>, vector<1x1x4x8x4xf32>
    %11 = vector.shape_cast %10 : vector<1x1x4x8x4xf32> to vector<4x8x4xf32>
    %c0_27 = arith.constant 0 : index
    %c0_28 = arith.constant 0 : index
    %c2_29 = arith.constant 2 : index
    %c0_30 = arith.constant 0 : index
    %c0_31 = arith.constant 0 : index
    %12 = vector.load %arg3[%c0_27, %c0_28, %c2_29, %c0_30, %c0_31] : memref<1x1x6x10x4xf32, #tpu.memory_space<vmem>>, vector<1x1x4x8x4xf32>
    %13 = vector.shape_cast %12 : vector<1x1x4x8x4xf32> to vector<4x8x4xf32>
    %c0_32 = arith.constant 0 : index
    %c0_33 = arith.constant 0 : index
    %c2_34 = arith.constant 2 : index
    %c1_35 = arith.constant 1 : index
    %c0_36 = arith.constant 0 : index
    %14 = vector.load %arg3[%c0_32, %c0_33, %c2_34, %c1_35, %c0_36] : memref<1x1x6x10x4xf32, #tpu.memory_space<vmem>>, vector<1x1x4x8x4xf32>
    %15 = vector.shape_cast %14 : vector<1x1x4x8x4xf32> to vector<4x8x4xf32>
    %c0_37 = arith.constant 0 : index
    %c0_38 = arith.constant 0 : index
    %c2_39 = arith.constant 2 : index
    %c2_40 = arith.constant 2 : index
    %c0_41 = arith.constant 0 : index
    %16 = vector.load %arg3[%c0_37, %c0_38, %c2_39, %c2_40, %c0_41] : memref<1x1x6x10x4xf32, #tpu.memory_space<vmem>>, vector<1x1x4x8x4xf32>
    %17 = vector.shape_cast %16 : vector<1x1x4x8x4xf32> to vector<4x8x4xf32>
    %18 = tpu.concatenate %1, %3, %5, %7, %9, %11, %13, %15, %17 in 2 : vector<4x8x4xf32>, vector<4x8x4xf32>, vector<4x8x4xf32>, vector<4x8x4xf32>, vector<4x8x4xf32>, vector<4x8x4xf32>, vector<4x8x4xf32>, vector<4x8x4xf32>, vector<4x8x4xf32> -> vector<4x8x36xf32>
    %19 = vector.shape_cast %18 : vector<4x8x36xf32> to vector<32x36xf32>
    %c0_42 = arith.constant 0 : index
    %c0_43 = arith.constant 0 : index
    %20 = vector.load %arg5[%c0_42, %c0_43] : memref<36x6xf32, #tpu.memory_space<vmem>>, vector<36x6xf32>
    %cst = arith.constant dense<0.000000e+00> : vector<32x6xf32>
    %21 = tpu.matmul %19, %20, %cst {dimension_numbers = #tpu.dot_dimension_numbers<[1], [0], [0], [1], [0, 0, 1, 1], [], []>, precision = #tpu.contract_precision<fp32>} : vector<32x36xf32>, vector<36x6xf32>, vector<32x6xf32> -> vector<32x6xf32>
    %22 = vector.shape_cast %21 : vector<32x6xf32> to vector<4x8x6xf32>
    %23 = vector.extract_strided_slice %22 {offsets = [0, 0, 4], sizes = [4, 8, 2], strides = [1, 1, 1]} : vector<4x8x6xf32> to vector<4x8x2xf32>
    %c0_44 = arith.constant 0 : index
    %c0_45 = arith.constant 0 : index
    %c0_46 = arith.constant 0 : index
    %c0_47 = arith.constant 0 : index
    %c0_48 = arith.constant 0 : index
    %24 = vector.load %arg7[%c0_44, %c0_45, %c0_46, %c0_47, %c0_48] : memref<1x1x4x8x2xf32, #tpu.memory_space<vmem>>, vector<1x1x4x8x2xf32>
    %25 = vector.shape_cast %24 : vector<1x1x4x8x2xf32> to vector<4x8x2xf32>
    %26 = vector.shape_cast %23 : vector<4x8x2xf32> to vector<1x1x4x8x2xf32>
    tpu.vector_store %arg7[%c0_44, %c0_45, %c0_46, %c0_47, %c0_48], %26 {strides = array<i32>} : memref<1x1x4x8x2xf32, #tpu.memory_space<vmem>>, vector<1x1x4x8x2xf32>,
    %27 = vector.extract_strided_slice %22 {offsets = [0, 0, 0], sizes = [4, 8, 4], strides = [1, 1, 1]} : vector<4x8x6xf32> to vector<4x8x4xf32>
    %28 = vector.shape_cast %27 : vector<4x8x4xf32> to vector<4x1x8x4xf32>
    %c0_49 = arith.constant 0 : index
    %c0_50 = arith.constant 0 : index
    %c0_51 = arith.constant 0 : index
    %c0_52 = arith.constant 0 : index
    %c0_53 = arith.constant 0 : index
    %29 = vector.load %arg2[%c0_49, %c0_50, %c0_51, %c0_52, %c0_53] : memref<1x1x10x9x4xf32, #tpu.memory_space<vmem>>, vector<1x1x8x8x4xf32>
    %30 = vector.shape_cast %29 : vector<1x1x8x8x4xf32> to vector<8x8x4xf32>
    %c0_54 = arith.constant 0 : index
    %c0_55 = arith.constant 0 : index
    %c0_56 = arith.constant 0 : index
    %c1_57 = arith.constant 1 : index
    %c0_58 = arith.constant 0 : index
    %31 = vector.load %arg2[%c0_54, %c0_55, %c0_56, %c1_57, %c0_58] : memref<1x1x10x9x4xf32, #tpu.memory_space<vmem>>, vector<1x1x8x8x4xf32>
    %32 = vector.shape_cast %31 : vector<1x1x8x8x4xf32> to vector<8x8x4xf32>
    %c0_59 = arith.constant 0 : index
    %c0_60 = arith.constant 0 : index
    %c1_61 = arith.constant 1 : index
    %c0_62 = arith.constant 0 : index
    %c0_63 = arith.constant 0 : index
    %33 = vector.load %arg2[%c0_59, %c0_60, %c1_61, %c0_62, %c0_63] : memref<1x1x10x9x4xf32, #tpu.memory_space<vmem>>, vector<1x1x8x8x4xf32>
    %34 = vector.shape_cast %33 : vector<1x1x8x8x4xf32> to vector<8x8x4xf32>
    %c0_64 = arith.constant 0 : index
    %c0_65 = arith.constant 0 : index
    %c1_66 = arith.constant 1 : index
    %c1_67 = arith.constant 1 : index
    %c0_68 = arith.constant 0 : index
    %35 = vector.load %arg2[%c0_64, %c0_65, %c1_66, %c1_67, %c0_68] : memref<1x1x10x9x4xf32, #tpu.memory_space<vmem>>, vector<1x1x8x8x4xf32>
    %36 = vector.shape_cast %35 : vector<1x1x8x8x4xf32> to vector<8x8x4xf32>
    %c0_69 = arith.constant 0 : index
    %c0_70 = arith.constant 0 : index
    %c2_71 = arith.constant 2 : index
    %c0_72 = arith.constant 0 : index
    %c0_73 = arith.constant 0 : index
    %37 = vector.load %arg2[%c0_69, %c0_70, %c2_71, %c0_72, %c0_73] : memref<1x1x10x9x4xf32, #tpu.memory_space<vmem>>, vector<1x1x8x8x4xf32>
    %38 = vector.shape_cast %37 : vector<1x1x8x8x4xf32> to vector<8x8x4xf32>
    %c0_74 = arith.constant 0 : index
    %c0_75 = arith.constant 0 : index
    %c2_76 = arith.constant 2 : index
    %c1_77 = arith.constant 1 : index
    %c0_78 = arith.constant 0 : index
    %39 = vector.load %arg2[%c0_74, %c0_75, %c2_76, %c1_77, %c0_78] : memref<1x1x10x9x4xf32, #tpu.memory_space<vmem>>, vector<1x1x8x8x4xf32>
    %40 = vector.shape_cast %39 : vector<1x1x8x8x4xf32> to vector<8x8x4xf32>
    %41 = tpu.concatenate %30, %32, %34, %36, %38, %40 in 2 : vector<8x8x4xf32>, vector<8x8x4xf32>, vector<8x8x4xf32>, vector<8x8x4xf32>, vector<8x8x4xf32>, vector<8x8x4xf32> -> vector<8x8x24xf32>
    %42 = vector.shape_cast %41 : vector<8x8x24xf32> to vector<64x24xf32>
    %c0_79 = arith.constant 0 : index
    %c0_80 = arith.constant 0 : index
    %43 = vector.load %arg4[%c0_79, %c0_80] : memref<24x4xf32, #tpu.memory_space<vmem>>, vector<24x4xf32>
    %cst_81 = arith.constant dense<0.000000e+00> : vector<64x4xf32>
    %44 = tpu.matmul %42, %43, %cst_81 {dimension_numbers = #tpu.dot_dimension_numbers<[1], [0], [0], [1], [0, 0, 1, 1], [], []>, precision = #tpu.contract_precision<fp32>} : vector<64x24xf32>, vector<24x4xf32>, vector<64x4xf32> -> vector<64x4xf32>
    %45 = vector.shape_cast %44 : vector<64x4xf32> to vector<4x2x8x4xf32>
    %46 = vector.broadcast %28 : vector<4x1x8x4xf32> to vector<4x2x8x4xf32>
    %47 = arith.addf %45, %46 : vector<4x2x8x4xf32>
    %48 = vector.shape_cast %47 : vector<4x2x8x4xf32> to vector<8x8x4xf32>
    %c0_82 = arith.constant 0 : index
    %c0_83 = arith.constant 0 : index
    %c0_84 = arith.constant 0 : index
    %c0_85 = arith.constant 0 : index
    %c0_86 = arith.constant 0 : index
    %49 = vector.load %arg6[%c0_82, %c0_83, %c0_84, %c0_85, %c0_86] : memref<1x1x8x8x4xf32, #tpu.memory_space<vmem>>, vector<1x1x8x8x4xf32>
    %50 = vector.shape_cast %49 : vector<1x1x8x8x4xf32> to vector<8x8x4xf32>
    %51 = vector.shape_cast %48 : vector<8x8x4xf32> to vector<1x1x8x8x4xf32>
    tpu.vector_store %arg6[%c0_82, %c0_83, %c0_84, %c0_85, %c0_86], %51 {strides = array<i32>} : memref<1x1x8x8x4xf32, #tpu.memory_space<vmem>>, vector<1x1x8x8x4xf32>,
    return
  }
  func.func @transform_0(%arg0: i32, %arg1: i32) -> (i32, i32, i32, i32, i32) {
    %c0_i32 = arith.constant 0 : i32
    %c0_i32_0 = arith.constant 0 : i32
    %c0_i32_1 = arith.constant 0 : i32
    %c0_i32_2 = arith.constant 0 : i32
    return %arg0, %arg1, %c0_i32, %c0_i32_0, %c0_i32_1 : i32, i32, i32, i32, i32
  }
  func.func @transform_1(%arg0: i32, %arg1: i32) -> (i32, i32, i32, i32, i32) {
    %c0_i32 = arith.constant 0 : i32
    %c0_i32_0 = arith.constant 0 : i32
    %c0_i32_1 = arith.constant 0 : i32
    %c0_i32_2 = arith.constant 0 : i32
    return %arg0, %arg1, %c0_i32, %c0_i32_0, %c0_i32_1 : i32, i32, i32, i32, i32
  }
  func.func @transform_2(%arg0: i32, %arg1: i32) -> (i32, i32) {
    %c0_i32 = arith.constant 0 : i32
    %c0_i32_0 = arith.constant 0 : i32
    %c0_i32_1 = arith.constant 0 : i32
    return %c0_i32, %c0_i32_0 : i32, i32
  }
  func.func @transform_3(%arg0: i32, %arg1: i32) -> (i32, i32) {
    %c0_i32 = arith.constant 0 : i32
    %c0_i32_0 = arith.constant 0 : i32
    %c0_i32_1 = arith.constant 0 : i32
    return %c0_i32, %c0_i32_0 : i32, i32
  }
  func.func @transform_4(%arg0: i32, %arg1: i32) -> (i32, i32, i32, i32, i32) {
    %c0_i32 = arith.constant 0 : i32
    %c0_i32_0 = arith.constant 0 : i32
    %c0_i32_1 = arith.constant 0 : i32
    %c0_i32_2 = arith.constant 0 : i32
    return %arg0, %arg1, %c0_i32, %c0_i32_0, %c0_i32_1 : i32, i32, i32, i32, i32
  }
  func.func @transform_5(%arg0: i32, %arg1: i32) -> (i32, i32, i32, i32, i32) {
    %c0_i32 = arith.constant 0 : i32
    %c0_i32_0 = arith.constant 0 : i32
    %c0_i32_1 = arith.constant 0 : i32
    %c0_i32_2 = arith.constant 0 : i32
    return %arg0, %arg1, %c0_i32, %c0_i32_0, %c0_i32_1 : i32, i32, i32, i32, i32
  }
}

</mosaic_0001>

<bundles_post_ra>
// kernel: octave_conv.1
= control target key start
LH: loop header
LB: loop body
LE: loop exit
PB: predicated region body
PF: predicated region fallthrough
CT: control target
= control target key end

     0   :  { %s2956_s18 = smov 0   ;;  %s2958_s19 = smov 0   ;;  %s3626_s0 = inlined_call_operand.vmem [shape: f32[2,2,10,9,4], index: 0, kind: input, shape index: {}]   ;;  %s3627_s1 = inlined_call_operand.vmem [shape: f32[2,2,6,10,4], index: 1, kind: input, shape index: {}]   ;;  %s3628_s2 = inlined_call_operand.vmem [shape: f32[24,4], index: 2, kind: input, shape index: {}]   ;;  %s3629_s3 = inlined_call_operand.vmem [shape: f32[36,6], index: 3, kind: input, shape index: {}]   ;;  %s3630_s4 = inlined_call_operand.vmem [shape: f32[2,2,8,8,4], index: 4, kind: output, shape index: {0}]   ;;  %s3631_s5 = inlined_call_operand.vmem [shape: f32[2,2,4,8,2], index: 5, kind: output, shape index: {1}]  }
   0x1   :  { %s2960_s20 = smov 0   ;;  %s2962_s21 = smov 0  }
   0x2   :  { %s2964_s22 = smov 0  }
   0x3 LB: > { %s25_s23 = sadd.s32 1, %s2907_s20  ;;  %s28_s24 = sadd.s32 1, %s2911_s21  ;;  %s2915_s22 = sphi %s2964_s22, %s16_s22   ;;  %s2911_s21 = sphi %s2962_s21, %s3635_s21   ;;  %s2907_s20 = sphi %s2960_s20, %s3634_s20   ;;  %s2903_s19 = sphi %s2958_s19, %s3633_s19   ;;  %s2899_s18 = sphi %s2956_s18, %s3632_s18  }
   0x4   : > { %p26_p0 = scmp.ge.s32.totalorder %s25_s23, 2  ;;  %p2433_p1 = scmp.ge.s32.totalorder %s2915_s22, 1 }
   0x5   : > { %p228_p2 = scmp.lt.s32.totalorder %s2915_s22, 5 }
   0x6   : > { %s3637_s23 = smov (%p26_p0, %s25_s23), 0  ;;  %s3639_s24 = smov (!%p26_p0, %s28_s24), %s2911_s21 }
   0x7   : > { %p229_p3 = pnand %p2433_p1, %p228_p2  ;;  %p30_p4 = scmp.ge.s32.totalorder %s3639_s24, 2 }
   0x8   : > { %p282_p5 = scmp.lt.s32.totalorder (!%p229_p3), %s2903_s19, 1  ;;  %p284_p6 = scmp.lt.s32.totalorder (!%p229_p3), %s2899_s18, 1 }
   0x9   : > { %s3641_s24 = smov (%p30_p4, %s3639_s24), 0  ;;  %232 = sbr.rel (%p229_p3) target bundleno = 545 (0x221), region = 36 }
   0xa   : > { %s2917_s7 = smov (!%p229_p3), 8   ;;  %s2918_s8 = smov (!%p229_p3), 4  }
   0xb   : > { %s2919_s9 = smov (!%p229_p3), 12   ;;  %s2920_s10 = smov (!%p229_p3), 16  }
   0xc   : > { %s2921_s17 = smov (!%p229_p3), 20   ;;  %s2922_s29 = smov (!%p229_p3), 24  }
   0xd   : > { %s2923_s30 = smov (!%p229_p3), 28   ;;  %s2924_s11 = smov (!%p229_p3), 32  }
   0xe   : > { %s3643_s19 = smov (!%p282_p5, %s2903_s19), 1  ;;  %s3645_s18 = smov (!%p284_p6, %s2899_s18), 1  ;;  %vm542_vm0 = vcmask 1043456   ;;  %v528_v7 = vld [vmem:[%s3629_s3 + $0x20] sm:$0xf]  ;;  %v527_v10 = vld [vmem:[%s3629_s3 + $0x18] sm:$0xff] }
   0xf   : > { %s2827_s25 = smul.u32 24, %s3643_s19  ;;  %v544_v9 = vsel %vm542_vm0, %v528_v7, 0  ;;  %v3027_v12 = vand.u32 4294901760, %v527_v10  ;;  %v526_v13 = vld [vmem:[%s3629_s3 + $0x10] sm:$0xff]  ;;  %v525_v17 = vld [vmem:[%s3629_s3 + $0x8] sm:$0xff]  ;;  %v524_v22 = vld [vmem:[%s3629_s3] sm:$0xff] }
  0x10   : > { %s2826_s26 = smul.u32 12, %s3645_s18  ;;  %v3025_v11 = vand.u32 4294901760, %v544_v9  ;;  %v3032_v14 = vand.u32 4294901760, %v526_v13  ;;  %v3048_v19 = vand.u32 4294901760, %v525_v17  ;;  %v3067_v25 = vand.u32 4294901760, %v524_v22  ;;  %s2440_s16 = sshll.u32 %s3643_s19, 3 }
  0x11   : > { %v3040_v16 = vsub.f32 %v527_v10, %v3027_v12  ;;  %s2824_s12 = smul.u32 20, %s3645_s18  ;;  %vm484_vm1 = vcmask 31744   ;;  %vm489_vm2 = vcmask 64512   ;;  %vm494_vm3 = vcmask 97280  }
  0x12   : > { %s297_s27 = sadd.s32 %s2827_s25, %s2826_s26  ;;  %v3037_v15 = vsub.f32 %v544_v9, %v3025_v11  ;;  %v3046_v18 = vsub.f32 %v526_v13, %v3032_v14  ;;  %2620 = vmatprep.subr.mxu0 %v3025_v11  ;;  %v3065_v24 = vsub.f32 %v525_v17, %v3048_v19  ;;  %v3084_v30 = vsub.f32 %v524_v22, %v3067_v25  ;;  %s2825_s13 = smul.u32 40, %s3643_s19 }
  0x13   : > { %s2435_s28 = sshll.u32 %s297_s27, 3  ;;  %v3055_v21 = vand.u32 4294901760, %v3040_v16  ;;  %2621 = vmatpush3.msra.mxu0 %v3025_v11  ;;  %vm499_vm4 = vcmask 130048   ;;  %vm504_vm5 = vcmask 162816   ;;  %vm509_vm6 = vcmask 195584   ;;  %s2925_s27 = smov 124  }
  0x14   : > { %s2995_s6 = scalar_lea.vmem %s3627_s1, %s2435_s28  ;;  %v3052_v20 = vand.u32 4294901760, %v3037_v15  ;;  %v3062_v23 = vand.u32 4294901760, %v3046_v18  ;;  %2622 = vmatprep.subr.mxu0 %v3027_v12  ;;  %v3081_v29 = vand.u32 4294901760, %v3065_v24  ;;  %v3091_v34 = vand.u32 4294901760, %v3084_v30  ;;  %s288_s14 = sadd.s32 %s2825_s13, %s2824_s12 }
  0x15   : > { %v326_v0 = vld [vmem:[%s2995_s6 + $0x2] sm:$0xff]  ;;  %v327_v2 = vld [vmem:[%s2995_s6 + $0x12] sm:$0xff]  ;;  %v689_v27 = vsub.f32 %v3040_v16, %v3055_v21  ;;  %2623 = vmatpush3.msra.mxu0 %v3027_v12  ;;  %s2434_s15 = sshll.u32 %s288_s14, 3  ;;  %vm514_vm7 = vcmask 228352   ;;  %vm519_vm8 = vcmask 261120   ;;  %vm529_vm9 = vcmask 293888  }
  0x16   : > { %v322_v1 = vld [vmem:[%s2995_s6 + $0x1] sm:$0xff]  ;;  %376 = vrot.lane.b32.xlu1 %v326_v0, %s2917_s7  ;;  %v323_v3 = vld [vmem:[%s2995_s6 + $0x11] sm:$0xff]  ;;  %v682_v26 = vsub.f32 %v3037_v15, %v3052_v20  ;;  %v696_v32 = vsub.f32 %v3046_v18, %v3062_v23  ;;  %2624 = vmatprep.subr.mxu0 %v3032_v14  ;;  %v703_v36 = vsub.f32 %v3065_v24, %v3081_v29  ;;  %s3137_s26 = scalar_lea.vmem %s3626_s0, %s2434_s15  ;;  %s2436_s28 = sshll.u32 %s3645_s18, 3  ;;  %vm1189_vm10 = vcmask 15360  }
  0x17   : > { %360 = vrot.lane.b32.xlu0 %v322_v1, %s2918_s8  ;;  %v3006_v4 = vld [vmem:[%s2995_s6 + $0x20] sm:$0xff]  ;;  %v3009_v5 = vld [vmem:[%s2995_s6 + $0x10] sm:$0xff]  ;;  %v690_v33 = vand.u32 4294901760, %v689_v27  ;;  %2625 = vmatpush3.msra.mxu0 %v3032_v14  ;;  %v710_v38 = vsub.f32 %v3084_v30, %v3091_v34  ;;  %s2439_s15 = sshll.u32 %s3645_s18, 2 }
  0x18   : > { %v2447_v6 = vld [vmem:[%s2995_s6 + $0x21] sm:$0xff]  ;;  %v3078_v28 = vld [vmem:[%s2995_s6 + $0x30] sm:$0xff]  ;;  %v683_v31 = vand.u32 4294901760, %v682_v26  ;;  %2626 = vmatprep.subr.mxu0 %v3048_v19  ;;  %v697_v37 = vand.u32 4294901760, %v696_v32  ;;  %v704_v39 = vand.u32 4294901760, %v703_v36  ;;  %s315_s25 = sadd.s32 %s2440_s16, %s2439_s15 }
  0x19   : > { %v2451_v8 = vld [vmem:[%s2995_s6 + $0x22] sm:$0xff]  ;;  %v325_v35 = vld [vmem:[%s2995_s6 + $0x31] sm:$0xff]  ;;  %2627 = vmatpush3.msra.mxu0 %v3048_v19  ;;  %v711_v40 = vand.u32 4294901760, %v710_v38 }
  0x1a   : > { %378 = vrot.lane.b32.xlu1 %v327_v2, %s2917_s7  ;;  %2636 = vmatprep.subr.mxu1 %v683_v31  ;;  %v329_v41 = vld [vmem:[%s2995_s6 + $0x32] sm:$0xff]  ;;  %v2445_v42 = vld [vmem:[%s2995_s6 + $0x40] sm:$0xff] }
  0x1b   : > { %362 = vrot.lane.b32.xlu0 %v323_v3, %s2918_s8  ;;  %2637 = vmatpush3.msra.mxu1 %v683_v31  ;;  %v2449_v43 = vld [vmem:[%s2995_s6 + $0x41] sm:$0xff]  ;;  %v2457_v45 = vld [vmem:[%s2995_s6 + $0x50] sm:$0xff] }
  0x1c   : > { %2638 = vmatprep.subr.mxu1 %v690_v33  ;;  %2628 = vmatprep.subr.mxu0 %v3067_v25  ;;  %v2453_v44 = vld [vmem:[%s2995_s6 + $0x42] sm:$0xff]  ;;  %v2461_v46 = vld [vmem:[%s2995_s6 + $0x51] sm:$0xff] }
  0x1d   : > { %2639 = vmatpush3.msra.mxu1 %v690_v33  ;;  %2629 = vmatpush3.msra.mxu0 %v3067_v25  ;;  %v2465_v47 = vld [vmem:[%s2995_s6 + $0x52] sm:$0xff]  ;;  %v1202_v49 = vld [vmem:[%s3137_s26 + $0x1] sm:$0xff] }
  0x1e   : > { %394 = vrot.lane.b32.xlu1 %v3006_v4, %s2919_s9  ;;  %2640 = vmatprep.subr.mxu1 %v697_v37  ;;  %v1203_v48 = vld [vmem:[%s3137_s26 + $0x11] sm:$0xff]  ;;  %v3146_v50 = vld [vmem:[%s3137_s26 + $0x20] sm:$0xff] }
  0x1f   : > { %392 = vrot.lane.b32.xlu0 %v3009_v5, %s2919_s9  ;;  %2652 = vmatprep.subr.mxu0 %v3037_v15  ;;  %v3149_v51 = vld [vmem:[%s3137_s26 + $0x10] sm:$0xff]  ;;  %v2475_v52 = vld [vmem:[%s3137_s26 + $0x21] sm:$0xff] }
  0x20   : > { %2641 = vmatpush3.msra.mxu1 %v697_v37  ;;  %v3162_v53 = vld [vmem:[%s3137_s26 + $0x30] sm:$0xff]  ;;  %v3172_v55 = vld [vmem:[%s3137_s26 + $0x40] sm:$0xff] }
  0x21   : > { %2642 = vmatprep.subr.mxu1 %v704_v39  ;;  %v1205_v54 = vld [vmem:[%s3137_s26 + $0x31] sm:$0xff]  ;;  %v2477_v56 = vld [vmem:[%s3137_s26 + $0x41] sm:$0xff] }
  0x22   : > { %410 = vrot.lane.b32.xlu1 %v2447_v6, %s2920_s10  ;;  %2643 = vmatpush3.msra.mxu1 %v704_v39  ;;  %v3184_v57 = vld [vmem:[%s3137_s26 + $0x50] sm:$0xff]  ;;  %v3194_v59 = vld [vmem:[%s3137_s26 + $0x60] sm:$0xff] }
  0x23   : > { %408 = vrot.lane.b32.xlu0 %v323_v3, %s2920_s10  ;;  %2644 = vmatprep.subr.mxu1 %v711_v40  ;;  %v1207_v58 = vld [vmem:[%s3137_s26 + $0x51] sm:$0xff]  ;;  %v2479_v60 = vld [vmem:[%s3137_s26 + $0x61] sm:$0xff] }
  0x24   : > { %2645 = vmatpush3.msra.mxu1 %v711_v40  ;;  %v3206_v63 = vld [vmem:[%s3137_s26 + $0x70] sm:$0xff]  ;;  %v2473_v7 = vld [vmem:[%s3137_s26 + $0x80] sm:$0xff] }
  0x25   : > { %2668 = vmatprep.subr.mxu1 %v3025_v11  ;;  %v2481_v10 = vld [vmem:[%s3137_s26 + $0x81] sm:$0xff]  ;;  %v2489_v22 = vld [vmem:[%s3137_s26 + $0x90] sm:$0xff] }
  0x26   : > { %426 = vrot.lane.b32.xlu1 %v2451_v8, %s2921_s17  ;;  %v318_v31 = vld [vmem:[%s2995_s6] sm:$0xff]  ;;  %v2497_v32 = vld [vmem:[%s3137_s26 + $0x91] sm:$0xff] }
  0x27   : > { %424 = vrot.lane.b32.xlu0 %v327_v2, %s2921_s17  ;;  %v1209_v2 = vld [vmem:[%s3137_s26 + $0x71] sm:$0xff] }
  0x2a   : > { %364 = vrot.lane.b32.xlu1 %v2447_v6, %s2918_s8 }
  0x2b   : > { %440 = vrot.lane.b32.xlu0 %v3006_v4, %s2922_s29 }
  0x2e   : > { %456 = vrot.lane.b32.xlu1 %v2447_v6, %s2923_s30 }
  0x2f   : > { %442 = vrot.lane.b32.xlu0 %v3078_v28, %s2922_s29 }
  0x32   : > { %380 = vrot.lane.b32.xlu1 %v2451_v8, %s2917_s7 }
  0x33   : > { %366 = vrot.lane.b32.xlu0 %v325_v35, %s2918_s8 }
  0x36   : > { %472 = vrot.lane.b32.xlu1 %v2451_v8, %s2924_s11 }
  0x37   : > { %458 = vrot.lane.b32.xlu0 %v325_v35, %s2923_s30 }
  0x3a   : > { %396 = vrot.lane.b32.xlu1 %v3078_v28, %s2919_s9 }
  0x3b   : > { %382 = vrot.lane.b32.xlu0 %v329_v41, %s2917_s7 }
  0x3e   : > { %398 = vrot.lane.b32.xlu1 %v2445_v42, %s2919_s9 }
  0x3f   : > { %474 = vrot.lane.b32.xlu0 %v329_v41, %s2924_s11 }
  0x42   : > { %414 = vrot.lane.b32.xlu1 %v2449_v43, %s2920_s10 }
  0x43   : > { %412 = vrot.lane.b32.xlu0 %v325_v35, %s2920_s10 }
  0x46   : > { %430 = vrot.lane.b32.xlu1 %v2453_v44, %s2921_s17 }
  0x47   : > { %428 = vrot.lane.b32.xlu0 %v329_v41, %s2921_s17 }
  0x4a   : > { %446 = vrot.lane.b32.xlu1 %v2457_v45, %s2922_s29 }
  0x4b   : > { %444 = vrot.lane.b32.xlu0 %v2445_v42, %s2922_s29  ;;  %s2437_s29 = sshll.u32 %s3643_s19, 4 }
  0x4e   : > { %462 = vrot.lane.b32.xlu1 %v2461_v46, %s2923_s30 }
  0x4f   : > { %460 = vrot.lane.b32.xlu0 %v2449_v43, %s2923_s30  ;;  %s306_s30 = sadd.s32 %s2437_s29, %s2436_s28 }
  0x52   : > { %478 = vrot.lane.b32.xlu1 %v2465_v47, %s2924_s11 }
  0x53   : > { %476 = vrot.lane.b32.xlu0 %v2453_v44, %s2924_s11  ;;  %s2438_s11 = sshll.u32 %s306_s30, 3 }
  0x54   : > { %s3578_s14 = scalar_lea.vmem %s3630_s4, %s2438_s11 }
  0x56   : > { %1254 = vrot.lane.b32.xlu1 %v1203_v48, %s2918_s8 }
  0x57   : > { %1252 = vrot.lane.b32.xlu0 %v1202_v49, %s2918_s8 }
  0x5a   : > { %1286 = vrot.lane.b32.xlu1 %v3146_v50, %s2917_s7 }
  0x5b   : > { %1284 = vrot.lane.b32.xlu0 %v3149_v51, %s2917_s7 }
  0x5e   : > { %1318 = vrot.lane.b32.xlu1 %v2475_v52, %s2919_s9 }
  0x5f   : > { %1316 = vrot.lane.b32.xlu0 %v1203_v48, %s2919_s9 }
  0x62   : > { %1256 = vrot.lane.b32.xlu1 %v2475_v52, %s2918_s8 }
  0x63   : > { %1348 = vrot.lane.b32.xlu0 %v3146_v50, %s2920_s10 }
  0x66   : > { %1380 = vrot.lane.b32.xlu1 %v2475_v52, %s2921_s17 }
  0x67   : > { %1350 = vrot.lane.b32.xlu0 %v3162_v53, %s2920_s10 }
  0x6a   : > { %1288 = vrot.lane.b32.xlu1 %v3162_v53, %s2917_s7 }
  0x6b   : > { %1258 = vrot.lane.b32.xlu0 %v1205_v54, %s2918_s8 }
  0x6e   : > { %1290 = vrot.lane.b32.xlu1 %v3172_v55, %s2917_s7 }
  0x6f   : > { %1382 = vrot.lane.b32.xlu0 %v1205_v54, %s2921_s17 }
  0x72   : > { %1322 = vrot.lane.b32.xlu1 %v2477_v56, %s2919_s9 }
  0x73   : > { %1320 = vrot.lane.b32.xlu0 %v1205_v54, %s2919_s9 }
  0x76   : > { %1260 = vrot.lane.b32.xlu1 %v2477_v56, %s2918_s8 }
  0x77   : > { %1352 = vrot.lane.b32.xlu0 %v3172_v55, %s2920_s10 }
  0x7a   : > { %1384 = vrot.lane.b32.xlu1 %v2477_v56, %s2921_s17 }
  0x7b   : > { %1354 = vrot.lane.b32.xlu0 %v3184_v57, %s2920_s10 }
  0x7e   : > { %1292 = vrot.lane.b32.xlu1 %v3184_v57, %s2917_s7 }
  0x7f   : > { %1262 = vrot.lane.b32.xlu0 %v1207_v58, %s2918_s8 }
  0x82   : > { %1294 = vrot.lane.b32.xlu1 %v3194_v59, %s2917_s7 }
  0x83   : > { %1386 = vrot.lane.b32.xlu0 %v1207_v58, %s2921_s17 }
  0x86   : > { %1326 = vrot.lane.b32.xlu1 %v2479_v60, %s2919_s9 }
  0x87   : > { %1324 = vrot.lane.b32.xlu0 %v1207_v58, %s2919_s9 }
  0x88   : > { %v377_v61 = vpop.permute.xlu1 %376 }
  0x89   : > { %v361_v62 = vpop.permute.xlu0 %360 }
  0x8a   : > { %1264 = vrot.lane.b32.xlu1 %v2479_v60, %s2918_s8  ;;  %v485_v33 = vsel %vm484_vm1, %v318_v31, %v361_v62 }
  0x8b   : > { %1356 = vrot.lane.b32.xlu0 %v3194_v59, %s2920_s10  ;;  %v490_v37 = vsel %vm489_vm2, %v485_v33, %v377_v61 }
  0x8c   : > { %v379_v0 = vpop.permute.xlu1 %378 }
  0x8d   : > { %v363_v1 = vpop.permute.xlu0 %362 }
  0x8e   : > { %1388 = vrot.lane.b32.xlu1 %v2479_v60, %s2921_s17  ;;  %v486_v44 = vsel %vm484_vm1, %v3009_v5, %v363_v1 }
  0x8f   : > { %1358 = vrot.lane.b32.xlu0 %v3206_v63, %s2920_s10  ;;  %v491_v52 = vsel %vm489_vm2, %v486_v44, %v379_v0 }
  0x90   : > { %v395_v3 = vpop.permute.xlu1 %394 }
  0x91   : > { %v393_v6 = vpop.permute.xlu0 %392  ;;  %v496_v56 = vsel %vm494_vm3, %v491_v52, %v395_v3 }
  0x92   : > { %1296 = vrot.lane.b32.xlu1 %v3206_v63, %s2917_s7  ;;  %v495_v38 = vsel %vm494_vm3, %v490_v37, %v393_v6 }
  0x93   : > { %1266 = vrot.lane.b32.xlu0 %v1209_v2, %s2918_s8 }
  0x94   : > { %v411_v8 = vpop.permute.xlu1 %410 }
  0x95   : > { %v409_v9 = vpop.permute.xlu0 %408  ;;  %v501_v61 = vsel %vm499_vm4, %v496_v56, %v411_v8 }
  0x96   : > { %1298 = vrot.lane.b32.xlu1 %v2473_v7, %s2917_s7  ;;  %v500_v41 = vsel %vm499_vm4, %v495_v38, %v409_v9 }
  0x97   : > { %1390 = vrot.lane.b32.xlu0 %v1209_v2, %s2921_s17 }
  0x98   : > { %v427_v13 = vpop.permute.xlu1 %426 }
  0x99   : > { %v425_v17 = vpop.permute.xlu0 %424  ;;  %v506_v62 = vsel %vm504_vm5, %v501_v61, %v427_v13 }
  0x9a   : > { %1330 = vrot.lane.b32.xlu1 %v2481_v10, %s2919_s9  ;;  %v505_v42 = vsel %vm504_vm5, %v500_v41, %v425_v17 }
  0x9b   : > { %1328 = vrot.lane.b32.xlu0 %v1209_v2, %s2919_s9 }
  0x9c   : > { %v3222_v26 = vpop.permute.xlu1 %364 }
  0x9d   : > { %v441_v27 = vpop.permute.xlu0 %440  ;;  %v487_v41 = vsel %vm484_vm1, %v3006_v4, %v3222_v26 }
  0x9e   : > { %1362 = vrot.lane.b32.xlu1 %v2489_v22, %s2920_s10  ;;  %v510_v43 = vsel %vm509_vm6, %v505_v42, %v441_v27 }
  0x9f   : > { %1360 = vrot.lane.b32.xlu0 %v2473_v7, %s2920_s10 }
  0xa0   : > { %v457_v35 = vpop.permute.xlu1 %456 }
  0xa1   : > { %v443_v36 = vpop.permute.xlu0 %442  ;;  %v515_v45 = vsel %vm514_vm7, %v510_v43, %v457_v35 }
  0xa2   : > { %1394 = vrot.lane.b32.xlu1 %v2497_v32, %s2921_s17  ;;  %v511_v1 = vsel %vm509_vm6, %v506_v62, %v443_v36 }
  0xa3   : > { %1392 = vrot.lane.b32.xlu0 %v2481_v10, %s2921_s17 }
  0xa4   : > { %v381_v39 = vpop.permute.xlu1 %380 }
  0xa5   : > { %v367_v40 = vpop.permute.xlu0 %366  ;;  %v492_v43 = vsel %vm489_vm2, %v487_v41, %v381_v39 }
  0xa6   : > { %v488_v42 = vsel %vm484_vm1, %v3078_v28, %v367_v40 }
  0xa8   : > { %v473_v46 = vpop.permute.xlu1 %472 }
  0xa9   : > { %v459_v47 = vpop.permute.xlu0 %458  ;;  %v520_v48 = vsel %vm519_vm8, %v515_v45, %v473_v46 }
  0xaa   : > { %v531_v49 = vsel %vm529_vm9, %v520_v48, 0  ;;  %v516_v0 = vsel %vm514_vm7, %v511_v1, %v459_v47 }
  0xab   : > { %v3242_v54 = vand.u32 4294901760, %v531_v49 }
  0xac   : > { %v397_v58 = vpop.permute.xlu1 %396 }
  0xad   : > { %v383_v60 = vpop.permute.xlu0 %382  ;;  %v3247_v5 = vsub.f32 %v531_v49, %v3242_v54  ;;  %2646 = vmatprep.mubr.f32.mxu1 %v3242_v54  ;;  %v497_v45 = vsel %vm494_vm3, %v492_v43, %v397_v58 }
  0xae   : > { %v493_v44 = vsel %vm489_vm2, %v488_v42, %v383_v60 }
  0xaf   : > { %v618_v2 = vand.u32 4294901760, %v3247_v5 }
  0xb0   : > { %v399_v6 = vpop.permute.xlu1 %398 }
  0xb1   : > { %v475_v7 = vpop.permute.xlu0 %474  ;;  %v619_v8 = vsub.f32 %v3247_v5, %v618_v2  ;;  %v498_v46 = vsel %vm494_vm3, %v493_v44, %v399_v6 }
  0xb2   : > { %v521_v3 = vsel %vm519_vm8, %v516_v0, %v475_v7 }
  0xb3   : > { %v534_v9 = vsel %vm529_vm9, %v521_v3, 0  ;;  %v620_v17 = vand.u32 4294901760, %v619_v8  ;;  %v1194_v8 = vld [vmem:[%s3137_s26] sm:$0xff]  ;;  %s2441_s26 = sshll.u32 %s315_s25, 3 }
  0xb4   : > { %v3259_v10 = vand.u32 4294901760, %v534_v9  ;;  %v415_v13 = vpop.permute.xlu1 %414  ;;  %s317_s8 = scalar_lea.vmem %s3631_s5, %s2441_s26 }
  0xb5   : > { %v413_v22 = vpop.permute.xlu0 %412  ;;  %2630 = vmatprep.mubr.f32.mxu0 %v620_v17 }
  0xb6   : > { %v3262_v27 = vsub.f32 %v534_v9, %v3259_v10  ;;  %2647 = vmatmul.mubr.f32.vlgmr.msra.gmra.mxu1 %v3259_v10  ;;  %v502_v28 = vsel %vm499_vm4, %v497_v45, %v413_v22  ;;  %v1444_v22 = vld [vmem:[%s3628_s2] sm:$0xff] }
  0xb7   : > { %2669 = vmatpush3.msra.mxu1 %v3025_v11  ;;  %v3344_v41 = vand.u32 4294901760, %v1444_v22 }
  0xb8   : > { %v628_v31 = vand.u32 4294901760, %v3262_v27  ;;  %2670 = vmatprep.subr.mxu1 %v3027_v12  ;;  %v431_v32 = vpop.permute.xlu1 %430 }
  0xb9   : > { %v429_v33 = vpop.permute.xlu0 %428  ;;  %2671 = vmatpush3.msra.mxu1 %v3027_v12 }
  0xba   : > { %v629_v35 = vsub.f32 %v3262_v27, %v628_v31  ;;  %2672 = vmatprep.subr.mxu1 %v3032_v14  ;;  %v507_v40 = vsel %vm504_vm5, %v502_v28, %v429_v33 }
  0xbb   : > { %2673 = vmatpush3.msra.mxu1 %v3032_v14 }
  0xbc   : > { %v630_v36 = vand.u32 4294901760, %v629_v35  ;;  %2674 = vmatprep.subr.mxu1 %v3048_v19  ;;  %v447_v37 = vpop.permute.xlu1 %446 }
  0xbd   : > { %v445_v38 = vpop.permute.xlu0 %444  ;;  %2675 = vmatpush3.msra.mxu1 %v3048_v19 }
  0xbe   : > { %2631 = vmatmul.mubr.f32.vlgmr.msra.gmra.mxu0 %v630_v36  ;;  %2676 = vmatprep.subr.mxu1 %v3067_v25  ;;  %v512_v48 = vsel %vm509_vm6, %v507_v40, %v445_v38 }
  0xbf   : > { %2653 = vmatpush3.msra.mxu0 %v3037_v15  ;;  %2677 = vmatpush3.msra.mxu1 %v3067_v25  ;;  %v503_v15 = vsel %vm499_vm4, %v498_v46, %v415_v13 }
  0xc0   : > { %2654 = vmatprep.subr.mxu0 %v3040_v16  ;;  %2700 = vmatprep.subr.mxu1 %v3025_v11  ;;  %v463_v4 = vpop.permute.xlu1 %462  ;;  %v508_v39 = vsel %vm504_vm5, %v503_v15, %v431_v32 }
  0xc1   : > { %v461_v26 = vpop.permute.xlu0 %460  ;;  %2655 = vmatpush3.msra.mxu0 %v3040_v16  ;;  %v513_v47 = vsel %vm509_vm6, %v508_v39, %v447_v37 }
  0xc2   : > { %2656 = vmatprep.subr.mxu0 %v3046_v18  ;;  %v518_v16 = vsel %vm514_vm7, %v513_v47, %v463_v4  ;;  %v517_v49 = vsel %vm514_vm7, %v512_v48, %v461_v26 }
  0xc3   : > { %2657 = vmatpush3.msra.mxu0 %v3046_v18 }
  0xc4   : > { %2658 = vmatprep.subr.mxu0 %v3065_v24  ;;  %v479_v52 = vpop.permute.xlu1 %478 }
  0xc5   : > { %v477_v56 = vpop.permute.xlu0 %476  ;;  %2659 = vmatpush3.msra.mxu0 %v3065_v24  ;;  %v523_v58 = vsel %vm519_vm8, %v518_v16, %v479_v52  ;;  %v1446_v24 = vld [vmem:[%s3628_s2 + $0x10] sm:$0xff] }
  0xc6   : > { %v522_v60 = vsel %vm519_vm8, %v517_v49, %v477_v56  ;;  %2660 = vmatprep.subr.mxu0 %v3084_v30  ;;  %v540_v18 = vsel %vm529_vm9, %v523_v58, 0  ;;  %v3327_v9 = vand.u32 4294901760, %v1446_v24 }
  0xc7   : > { %v537_v61 = vsel %vm529_vm9, %v522_v60, 0  ;;  %2661 = vmatpush3.msra.mxu0 %v3084_v30  ;;  %v3309_v62 = vand.u32 4294901760, %v540_v18  ;;  %v1445_v30 = vld [vmem:[%s3628_s2 + $0x8] sm:$0xff] }
  0xc8   : > { %v3311_v1 = vand.u32 4294901760, %v537_v61  ;;  %2684 = vmatprep.subr.mxu0 %v3052_v20  ;;  %v1255_v0 = vpop.permute.xlu1 %1254  ;;  %v3335_v35 = vand.u32 4294901760, %v1445_v30 }
  0xc9   : > { %v1253_v6 = vpop.permute.xlu0 %1252  ;;  %v3318_v7 = vsub.f32 %v540_v18, %v3309_v62  ;;  %v1405_v39 = vsel %vm484_vm1, %v3149_v51, %v1255_v0 }
  0xca   : > { %v637_v3 = vsub.f32 %v537_v61, %v3311_v1  ;;  %2649 = vmatprep.mubr.f32.mxu1 %v3311_v1  ;;  %v1404_v36 = vsel %vm484_vm1, %v1194_v8, %v1253_v6  ;;  %v3350_v4 = vsub.f32 %v1445_v30, %v3335_v35 }
  0xcb   : > { %2650 = vmatmul.mubr.f32.gmra.mxu1 %v3309_v62  ;;  %v648_v13 = vand.u32 4294901760, %v3318_v7 }
  0xcc   : > { %2678 = vmatprep.mubr.f32.mxu1 %v618_v2  ;;  %v638_v17 = vand.u32 4294901760, %v637_v3  ;;  %v1287_v32 = vpop.permute.xlu1 %1286  ;;  %v3342_v2 = vsub.f32 %v1446_v24, %v3327_v9  ;;  %v3365_v28 = vand.u32 4294901760, %v3350_v4 }
  0xcd   : > { %v1285_v33 = vpop.permute.xlu0 %1284  ;;  %v649_v38 = vsub.f32 %v3318_v7, %v648_v13  ;;  %v1413_v51 = vsel %vm489_vm2, %v1405_v39, %v1287_v32 }
  0xce   : > { %v639_v37 = vsub.f32 %v637_v3, %v638_v17  ;;  %v1412_v44 = vsel %vm489_vm2, %v1404_v36, %v1285_v33 }
  0xcf   : > { %2679 = vmatmul.mubr.f32.vlgmr.msra.gmra.mxu1 %v628_v31  ;;  %v650_v43 = vand.u32 4294901760, %v649_v38  ;;  %v3358_v31 = vsub.f32 %v1444_v22, %v3344_v41 }
  0xd0   : > { %2701 = vmatpush3.msra.mxu1 %v3025_v11  ;;  %2681 = vmatprep.mubr.f32.mxu1 %v638_v17  ;;  %v640_v42 = vand.u32 4294901760, %v639_v37  ;;  %v1319_v45 = vpop.permute.xlu1 %1318  ;;  %v3355_v11 = vand.u32 4294901760, %v3342_v2 }
  0xd1   : > { %2702 = vmatprep.subr.mxu1 %v3027_v12  ;;  %v1317_v46 = vpop.permute.xlu0 %1316  ;;  %v1421_v49 = vsel %vm494_vm3, %v1413_v51, %v1319_v45 }
  0xd2   : > { %2703 = vmatpush3.msra.mxu1 %v3027_v12  ;;  %2633 = vmatprep.mubr.f32.mxu0 %v640_v42  ;;  %v1420_v26 = vsel %vm494_vm3, %v1412_v44, %v1317_v46 }
  0xd3   : > { %2704 = vmatprep.subr.mxu1 %v3032_v14  ;;  %2634 = vmatmul.mubr.f32.gmra.mxu0 %v650_v43 }
  0xd4   : > { %2682 = vmatmul.mubr.f32.gmra.mxu1 %v648_v13  ;;  %2662 = vmatprep.mubr.f32.mxu0 %v3247_v5  ;;  %v1257_v12 = vpop.permute.xlu1 %1256  ;;  %v3376_v5 = vand.u32 4294901760, %v3358_v31 }
  0xd5   : > { %2705 = vmatpush3.msra.mxu1 %v3032_v14  ;;  %2710 = vmatprep.mubr.f32.mxu1 %v3242_v54  ;;  %v1349_v15 = vpop.permute.xlu0 %1348  ;;  %v1649_v14 = vsub.f32 %v3342_v2, %v3355_v11  ;;  %v1406_v0 = vsel %vm484_vm1, %v3146_v50, %v1257_v12 }
  0xd6   : > { %2706 = vmatprep.subr.mxu1 %v3048_v19  ;;  %v1428_v40 = vsel %vm499_vm4, %v1420_v26, %v1349_v15 }
  0xd7   : > { %2707 = vmatpush3.msra.mxu1 %v3048_v19  ;;  %2663 = vmatmul.mubr.f32.vlgmr.msra.gmra.mxu0 %v3262_v27  ;;  %v1656_v27 = vsub.f32 %v3350_v4, %v3365_v28  ;;  %v1650_v16 = vand.u32 4294901760, %v1649_v14 }
  0xd8   : > { %2708 = vmatprep.subr.mxu1 %v3067_v25  ;;  %2685 = vmatpush3.msra.mxu0 %v3052_v20  ;;  %v1381_v19 = vpop.permute.xlu1 %1380 }
  0xd9   : > { %2709 = vmatpush3.msra.mxu1 %v3067_v25  ;;  %2665 = vmatprep.mubr.f32.mxu0 %v637_v3  ;;  %v1351_v47 = vpop.permute.xlu0 %1350  ;;  %v1436_v48 = vsel %vm504_vm5, %v1428_v40, %v1381_v19  ;;  %v1663_v25 = vsub.f32 %v3358_v31, %v3376_v5  ;;  %v1657_v58 = vand.u32 4294901760, %v1656_v27 }
  0xda   : > { %2686 = vmatprep.subr.mxu0 %v3055_v21  ;;  %2711 = vmatmul.mubr.f32.vlgmr.msra.gmra.mxu1 %v3259_v10  ;;  %v1448_v20 = vsel %vm509_vm6, %v1436_v48, 0  ;;  %v1429_v18 = vsel %vm499_vm4, %v1421_v49, %v1351_v47 }
  0xdb   : > { %2687 = vmatpush3.msra.mxu0 %v3055_v21  ;;  %2713 = vmatprep.mubr.f32.mxu1 %v3311_v1  ;;  %v3393_v52 = vand.u32 4294901760, %v1448_v20  ;;  %v1664_v61 = vand.u32 4294901760, %v1663_v25 }
  0xdc   : > { %2688 = vmatprep.subr.mxu0 %v3062_v23  ;;  %2666 = vmatmul.mubr.f32.gmra.mxu0 %v3318_v7  ;;  %v1289_v21 = vpop.permute.xlu1 %1288 }
  0xdd   : > { %2689 = vmatpush3.msra.mxu0 %v3062_v23  ;;  %2694 = vmatprep.mubr.f32.mxu0 %v3242_v54  ;;  %v1259_v56 = vpop.permute.xlu0 %1258  ;;  %v3400_v60 = vsub.f32 %v1448_v20, %v3393_v52 }
  0xde   : > { %2690 = vmatprep.subr.mxu0 %v3081_v29  ;;  %2714 = vmatmul.mubr.f32.gmra.mxu1 %v3309_v62  ;;  %v1407_v33 = vsel %vm484_vm1, %v3162_v53, %v1259_v56 }
  0xdf   : > { %2691 = vmatpush3.msra.mxu0 %v3081_v29  ;;  %2734 = vmatprep.subr.mxu1 %v1650_v16  ;;  %v1541_v23 = vand.u32 4294901760, %v3400_v60 }
  0xe0   : > { %2692 = vmatprep.subr.mxu0 %v3091_v34  ;;  %2735 = vmatpush3.msra.mxu1 %v1650_v16  ;;  %v1291_v54 = vpop.permute.xlu1 %1290 }
  0xe1   : > { %2693 = vmatpush3.msra.mxu0 %v3091_v34  ;;  %v1383_v24 = vpop.permute.xlu0 %1382  ;;  %2736 = vmatprep.subr.mxu1 %v1657_v58  ;;  %v1542_v29 = vsub.f32 %v3400_v60, %v1541_v23  ;;  %v1415_v43 = vsel %vm489_vm2, %v1407_v33, %v1291_v54 }
  0xe2   : > { %2695 = vmatmul.mubr.f32.vlgmr.msra.gmra.mxu0 %v3259_v10  ;;  %v1437_v6 = vsel %vm504_vm5, %v1429_v18, %v1383_v24  ;;  %2737 = vmatpush3.msra.mxu1 %v1657_v58  ;;  %v1414_v10 = vsel %vm489_vm2, %v1406_v0, %v1289_v21 }
  0xe3   : > { %2697 = vmatprep.mubr.f32.mxu0 %v3311_v1  ;;  %v1451_v7 = vsel %vm509_vm6, %v1437_v6, 0  ;;  %2738 = vmatprep.subr.mxu1 %v1664_v61  ;;  %v1543_v50 = vand.u32 4294901760, %v1542_v29 }
  0xe4   : > { %v3418_v34 = vand.u32 4294901760, %v1451_v7  ;;  %2740 = vmatprep.mubr.f32.mxu1 %v3393_v52  ;;  %2739 = vmatpush3.msra.mxu1 %v1664_v61  ;;  %v1323_v3 = vpop.permute.xlu1 %1322 }
  0xe5   : > { %v1321_v30 = vpop.permute.xlu0 %1320  ;;  %2716 = vmatprep.subr.mxu0 %v3327_v9  ;;  %2770 = vmatprep.subr.mxu1 %v3327_v9  ;;  %v1423_v26 = vsel %vm494_vm3, %v1415_v43, %v1323_v3 }
  0xe6   : > { %v3425_v8 = vsub.f32 %v1451_v7, %v3418_v34  ;;  %2698 = vmatmul.mubr.f32.gmra.mxu0 %v3309_v62  ;;  %2741 = vmatmul.mubr.f32.vlgmr.msra.gmra.mxu1 %v3418_v34  ;;  %v1422_v17 = vsel %vm494_vm3, %v1414_v10, %v1321_v30 }
  0xe7   : > { %2722 = vmatprep.mubr.f32.mxu0 %v1543_v50  ;;  %2717 = vmatpush3.msra.mxu0 %v3327_v9 }
  0xe8   : > { %v1551_v1 = vand.u32 4294901760, %v3425_v8  ;;  %2718 = vmatprep.subr.mxu0 %v3335_v35  ;;  %2771 = vmatpush3.msra.mxu1 %v3327_v9  ;;  %v1261_v13 = vpop.permute.xlu1 %1260 }
  0xe9   : > { %v1353_v22 = vpop.permute.xlu0 %1352  ;;  %2719 = vmatpush3.msra.mxu0 %v3335_v35  ;;  %2772 = vmatprep.subr.mxu1 %v3335_v35 }
  0xea   : > { %v1552_v62 = vsub.f32 %v3425_v8, %v1551_v1  ;;  %2720 = vmatprep.subr.mxu0 %v3344_v41  ;;  %2773 = vmatpush3.msra.mxu1 %v3335_v35  ;;  %v1430_v32 = vsel %vm499_vm4, %v1422_v17, %v1353_v22 }
  0xeb   : > { %2721 = vmatpush3.msra.mxu0 %v3344_v41  ;;  %2774 = vmatprep.subr.mxu1 %v3344_v41 }
  0xec   : > { %v1553_v36 = vand.u32 4294901760, %v1552_v62  ;;  %2775 = vmatpush3.msra.mxu1 %v3344_v41  ;;  %2752 = vmatprep.subr.mxu0 %v3342_v2  ;;  %v1385_v37 = vpop.permute.xlu1 %1384 }
  0xed   : > { %v1355_v38 = vpop.permute.xlu0 %1354  ;;  %2806 = vmatprep.subr.mxu1 %v3327_v9  ;;  %v1438_v42 = vsel %vm504_vm5, %v1430_v32, %v1385_v37 }
  0xee   : > { %2723 = vmatmul.mubr.f32.vlgmr.msra.gmra.mxu0 %v1553_v36  ;;  %v1454_v44 = vsel %vm509_vm6, %v1438_v42, 0  ;;  %v1431_v15 = vsel %vm499_vm4, %v1423_v26, %v1355_v38 }
  0xef   : > { %2753 = vmatpush3.msra.mxu0 %v3342_v2  ;;  %v3453_v45 = vand.u32 4294901760, %v1454_v44 }
  0xf0   : > { %2754 = vmatprep.subr.mxu0 %v3350_v4  ;;  %v1293_v53 = vpop.permute.xlu1 %1292 }
  0xf1   : > { %v1263_v46 = vpop.permute.xlu0 %1262  ;;  %2755 = vmatpush3.msra.mxu0 %v3350_v4  ;;  %v3459_v12 = vsub.f32 %v1454_v44, %v3453_v45  ;;  %2743 = vmatprep.mubr.f32.mxu1 %v3453_v45  ;;  %v1408_v4 = vsel %vm484_vm1, %v3172_v55, %v1261_v13 }
  0xf2   : > { %2756 = vmatprep.subr.mxu0 %v3358_v31  ;;  %v1416_v27 = vsel %vm489_vm2, %v1408_v4, %v1293_v53  ;;  %v1409_v18 = vsel %vm484_vm1, %v3184_v57, %v1263_v46 }
  0xf3   : > { %2757 = vmatpush3.msra.mxu0 %v3358_v31  ;;  %v1561_v2 = vand.u32 4294901760, %v3459_v12 }
  0xf4   : > { %2788 = vmatprep.subr.mxu0 %v3355_v11  ;;  %v1295_v39 = vpop.permute.xlu1 %1294 }
  0xf5   : > { %v1387_v40 = vpop.permute.xlu0 %1386  ;;  %v1562_v51 = vsub.f32 %v3459_v12, %v1561_v2  ;;  %v1417_v6 = vsel %vm489_vm2, %v1409_v18, %v1295_v39 }
  0xf6   : > { %v1439_v14 = vsel %vm504_vm5, %v1431_v15, %v1387_v40 }
  0xf7   : > { %v1457_v19 = vsel %vm509_vm6, %v1439_v14, 0  ;;  %v1563_v47 = vand.u32 4294901760, %v1562_v51 }
  0xf8   : > { %v3474_v31 = vand.u32 4294901760, %v1457_v19  ;;  %v1327_v48 = vpop.permute.xlu1 %1326 }
  0xf9   : > { %v1325_v20 = vpop.permute.xlu0 %1324  ;;  %2725 = vmatprep.mubr.f32.mxu0 %v1563_v47  ;;  %v1425_v3 = vsel %vm494_vm3, %v1417_v6, %v1327_v48 }
  0xfa   : > { %v3478_v16 = vsub.f32 %v1457_v19, %v3474_v31  ;;  %2744 = vmatmul.mubr.f32.gmra.mxu1 %v3474_v31  ;;  %v1424_v55 = vsel %vm494_vm3, %v1416_v27, %v1325_v20 }
  0xfc   : > { %v1571_v25 = vand.u32 4294901760, %v3478_v16  ;;  %v1265_v49 = vpop.permute.xlu1 %1264 }
  0xfd   : > { %v1357_v21 = vpop.permute.xlu0 %1356  ;;  %v1410_v62 = vsel %vm484_vm1, %v3194_v59, %v1265_v49 }
  0xfe   : > { %v1572_v56 = vsub.f32 %v3478_v16, %v1571_v25  ;;  %v1432_v58 = vsel %vm499_vm4, %v1424_v55, %v1357_v21 }
 0x100   : > { %v1573_v61 = vand.u32 4294901760, %v1572_v56  ;;  %v1389_v54 = vpop.permute.xlu1 %1388 }
 0x101   : > { %v1359_v24 = vpop.permute.xlu0 %1358  ;;  %v1440_v0 = vsel %vm504_vm5, %v1432_v58, %v1389_v54 }
 0x102   : > { %2726 = vmatmul.mubr.f32.gmra.mxu0 %v1573_v61  ;;  %v1460_v29 = vsel %vm509_vm6, %v1440_v0, 0  ;;  %v1433_v17 = vsel %vm499_vm4, %v1425_v3, %v1359_v24 }
 0x103   : > { %v3492_v7 = vand.u32 4294901760, %v1460_v29 }
 0x104   : > { %v1297_v10 = vpop.permute.xlu1 %1296 }
 0x105   : > { %v1267_v50 = vpop.permute.xlu0 %1266  ;;  %v3496_v30 = vsub.f32 %v1460_v29, %v3492_v7  ;;  %2746 = vmatprep.mubr.f32.mxu1 %v3492_v7  ;;  %v1418_v43 = vsel %vm489_vm2, %v1410_v62, %v1297_v10 }
 0x106   : > { %v1411_v32 = vsel %vm484_vm1, %v3206_v63, %v1267_v50 }
 0x107   : > { %v1581_v57 = vand.u32 4294901760, %v3496_v30 }
 0x108   : > { %v1299_v22 = vpop.permute.xlu1 %1298 }
 0x109   : > { %v1391_v13 = vpop.permute.xlu0 %1390  ;;  %v1582_v36 = vsub.f32 %v3496_v30, %v1581_v57  ;;  %v1419_v44 = vsel %vm489_vm2, %v1411_v32, %v1299_v22 }
 0x10a   : > { %v1441_v33 = vsel %vm504_vm5, %v1433_v17, %v1391_v13 }
 0x10b   : > { %v1463_v37 = vsel %vm509_vm6, %v1441_v33, 0  ;;  %v1583_v42 = vand.u32 4294901760, %v1582_v36 }
 0x10c   : > { %v3508_v38 = vand.u32 4294901760, %v1463_v37  ;;  %v1331_v46 = vpop.permute.xlu1 %1330 }
 0x10d   : > { %v1329_v53 = vpop.permute.xlu0 %1328  ;;  %2728 = vmatprep.mubr.f32.mxu0 %v1583_v42  ;;  %v1427_v26 = vsel %vm494_vm3, %v1419_v44, %v1331_v46 }
 0x10e   : > { %v1590_v59 = vsub.f32 %v1463_v37, %v3508_v38  ;;  %2747 = vmatmul.mubr.f32.gmra.mxu1 %v3508_v38  ;;  %v1426_v63 = vsel %vm494_vm3, %v1418_v43, %v1329_v53 }
 0x110   : > { %v1591_v15 = vand.u32 4294901760, %v1590_v59  ;;  %v1363_v40 = vpop.permute.xlu1 %1362 }
 0x111   : > { %v1361_v39 = vpop.permute.xlu0 %1360  ;;  %v1435_v51 = vsel %vm499_vm4, %v1427_v26, %v1363_v40 }
 0x112   : > { %v1592_v4 = vsub.f32 %v1590_v59, %v1591_v15  ;;  %v1434_v14 = vsel %vm499_vm4, %v1426_v63, %v1361_v39 }
 0x114   : > { %v1593_v19 = vand.u32 4294901760, %v1592_v4  ;;  %v1395_v27 = vpop.permute.xlu1 %1394 }
 0x115   : > { %v1393_v47 = vpop.permute.xlu0 %1392  ;;  %v1443_v20 = vsel %vm504_vm5, %v1435_v51, %v1395_v27 }
 0x116   : > { %v1442_v48 = vsel %vm504_vm5, %v1434_v14, %v1393_v47  ;;  %2729 = vmatmul.mubr.f32.gmra.mxu0 %v1593_v19  ;;  %v1469_v49 = vsel %vm509_vm6, %v1443_v20, 0 }
 0x117   : > { %v1466_v55 = vsel %vm509_vm6, %v1442_v48, 0  ;;  %v1609_v56 = vand.u32 4294901760, %v1469_v49 }
 0x118   : > { %v1599_v21 = vand.u32 4294901760, %v1466_v55 }
 0x119   : > { %v1610_v18 = vsub.f32 %v1469_v49, %v1609_v56 }
 0x11a   : > { %v1600_v58 = vsub.f32 %v1466_v55, %v1599_v21  ;;  %2749 = vmatprep.mubr.f32.mxu1 %v1599_v21 }
 0x11b   : > { %2750 = vmatmul.mubr.f32.gmra.mxu1 %v1609_v56  ;;  %v1611_v54 = vand.u32 4294901760, %v1610_v18 }
 0x11c   : > { %2776 = vmatprep.mubr.f32.mxu1 %v1541_v23  ;;  %v1601_v61 = vand.u32 4294901760, %v1600_v58 }
 0x11d   : > { %v1612_v0 = vsub.f32 %v1610_v18, %v1611_v54 }
 0x11e   : > { %v1602_v24 = vsub.f32 %v1600_v58, %v1601_v61 }
 0x11f   : > { %2777 = vmatmul.mubr.f32.vlgmr.msra.gmra.mxu1 %v1551_v1  ;;  %v1613_v29 = vand.u32 4294901760, %v1612_v0 }
 0x120   : > { %2779 = vmatprep.mubr.f32.mxu1 %v1561_v2  ;;  %v1603_v6 = vand.u32 4294901760, %v1602_v24  ;;  %2807 = vmatpush3.msra.mxu1 %v3327_v9 }
 0x121   : > { %2808 = vmatprep.subr.mxu1 %v3335_v35 }
 0x122   : > { %2731 = vmatprep.mubr.f32.mxu0 %v1603_v6  ;;  %2809 = vmatpush3.msra.mxu1 %v3335_v35 }
 0x123   : > { %2732 = vmatmul.mubr.f32.gmra.mxu0 %v1613_v29  ;;  %2780 = vmatmul.mubr.f32.gmra.mxu1 %v1571_v25 }
 0x124   : > { %2758 = vmatprep.mubr.f32.mxu0 %v3400_v60  ;;  %2782 = vmatprep.mubr.f32.mxu1 %v1581_v57 }
 0x125   : > { %2810 = vmatprep.subr.mxu1 %v3344_v41 }
 0x126   : > { %2811 = vmatpush3.msra.mxu1 %v3344_v41 }
 0x127   : > { %2759 = vmatmul.mubr.f32.vlgmr.msra.gmra.mxu0 %v3425_v8  ;;  %2783 = vmatmul.mubr.f32.gmra.mxu1 %v1591_v15 }
 0x128   : > { %2761 = vmatprep.mubr.f32.mxu0 %v3459_v12  ;;  %2785 = vmatprep.mubr.f32.mxu1 %v1601_v61 }
 0x129   : > { %2789 = vmatpush3.msra.mxu0 %v3355_v11 }
 0x12a   : > { %2790 = vmatprep.subr.mxu0 %v3365_v28 }
 0x12b   : > { %2762 = vmatmul.mubr.f32.gmra.mxu0 %v3478_v16  ;;  %2786 = vmatmul.mubr.f32.gmra.mxu1 %v1611_v54 }
 0x12c   : > { %2764 = vmatprep.mubr.f32.mxu0 %v3496_v30  ;;  %2812 = vmatprep.mubr.f32.mxu1 %v3393_v52 }
 0x12d   : > { %2791 = vmatpush3.msra.mxu0 %v3365_v28 }
 0x12e   : > { %2792 = vmatprep.subr.mxu0 %v3376_v5 }
 0x12f   : > { %2765 = vmatmul.mubr.f32.gmra.mxu0 %v1590_v59  ;;  %2813 = vmatmul.mubr.f32.vlgmr.msra.gmra.mxu1 %v3418_v34 }
 0x130   : > { %2767 = vmatprep.mubr.f32.mxu0 %v1600_v58  ;;  %2815 = vmatprep.mubr.f32.mxu1 %v3453_v45 }
 0x131   : > { %2793 = vmatpush3.msra.mxu0 %v3376_v5 }
 0x133   : > { %2768 = vmatmul.mubr.f32.gmra.mxu0 %v1610_v18  ;;  %2816 = vmatmul.mubr.f32.gmra.mxu1 %v3474_v31 }
 0x134   : > { %2794 = vmatprep.mubr.f32.mxu0 %v3393_v52  ;;  %2818 = vmatprep.mubr.f32.mxu1 %v3492_v7 }
 0x137   : > { %2795 = vmatmul.mubr.f32.vlgmr.msra.gmra.mxu0 %v3418_v34  ;;  %2819 = vmatmul.mubr.f32.gmra.mxu1 %v3508_v38 }
 0x138   : > { %2797 = vmatprep.mubr.f32.mxu0 %v3453_v45  ;;  %2821 = vmatprep.mubr.f32.mxu1 %v1599_v21 }
 0x13b   : > { %2798 = vmatmul.mubr.f32.gmra.mxu0 %v3474_v31  ;;  %2822 = vmatmul.mubr.f32.gmra.mxu1 %v1609_v56 }
 0x13c   : > { %2800 = vmatprep.mubr.f32.mxu0 %v3492_v7 }
 0x13f   : > { %2801 = vmatmul.mubr.f32.gmra.mxu0 %v3508_v38 }
 0x140   : > { %2803 = vmatprep.mubr.f32.mxu0 %v1599_v21 }
 0x143   : > { %2804 = vmatmul.mubr.f32.gmra.mxu0 %v1609_v56 }
 0x176   : > { %v2648_v9 = vpop.f32.mrf.mxu1 }
 0x178   : > { %v748_v35 = vpop.f32.mrf.mxu1 }
 0x17e   : > { %v2632_v11 = vpop.f32.mrf.mxu0 }
 0x17f   : > { %v755_v2 = vadd.f32 %v2648_v9, %v2632_v11 }
 0x180   : > { %v622_v52 = vpop.f32.mrf.mxu0 }
 0x181   : > { %v749_v16 = vadd.f32 %v748_v35, %v622_v52 }
 0x18b   : > { %v2651_v41 = vpop.f32.mrf.mxu1 }
 0x18d   : > { %v760_v28 = vpop.f32.mrf.mxu1 }
 0x18f   : > { %v2680_v5 = vpop.f32.mrf.mxu1 }
 0x191   : > { %v947_v60 = vpop.f32.mrf.mxu1 }
 0x193   : > { %v2635_v23 = vpop.f32.mrf.mxu0 }
 0x194   : > { %v2683_v8 = vpop.f32.mrf.mxu1  ;;  %v767_v10 = vadd.f32 %v2651_v41, %v2635_v23 }
 0x195   : > { %v642_v34 = vpop.f32.mrf.mxu0 }
 0x196   : > { %v963_v12 = vpop.f32.mrf.mxu1  ;;  %v761_v30 = vadd.f32 %v760_v28, %v642_v34 }
 0x197   : > { %v2664_v1 = vpop.f32.mrf.mxu0 }
 0x198   : > { %v856_v25 = vadd.f32 %v2664_v1, %v755_v2 }
 0x199   : > { %v848_v45 = vpop.f32.mrf.mxu0 }
 0x19a   : > { %v2712_v7 = vpop.f32.mrf.mxu1  ;;  %v849_v3 = vadd.f32 %v848_v45, %v749_v16  ;;  %v956_v17 = vadd.f32 %v2680_v5, %v856_v25 }
 0x19c   : > { %v2667_v31 = vpop.f32.mrf.mxu0  ;;  %v1151_v13 = vpop.f32.mrf.mxu1  ;;  %v948_v33 = vadd.f32 %v947_v60, %v849_v3 }
 0x19d   : > { %v870_v57 = vadd.f32 %v2667_v31, %v767_v10 }
 0x19e   : > { %v862_v50 = vpop.f32.mrf.mxu0  ;;  %v2715_v43 = vpop.f32.mrf.mxu1 }
 0x19f   : > { %v863_v62 = vadd.f32 %v862_v50, %v761_v30  ;;  %v972_v42 = vadd.f32 %v2683_v8, %v870_v57 }
 0x1a0   : > { %v1163_v39 = vpop.f32.mrf.mxu1 }
 0x1a1   : > { %v964_v59 = vadd.f32 %v963_v12, %v863_v62 }
 0x1a2   : > { %v2696_v22 = vpop.f32.mrf.mxu0 }
 0x1a3   : > { %v1064_v32 = vadd.f32 %v2696_v22, %v956_v17 }
 0x1a4   : > { %v1057_v36 = vpop.f32.mrf.mxu0 }
 0x1a5   : > { %v3557_v37 = vadd.f32 %v2712_v7, %v1064_v32  ;;  %v1058_v38 = vadd.f32 %v1057_v36, %v948_v33 }
 0x1a6   : > { %v2699_v44 = vpop.f32.mrf.mxu0  ;;  %v2742_v4 = vpop.f32.mrf.mxu1 }
 0x1a7   : > { %v3559_v53 = vadd.f32 %v1151_v13, %v1058_v38  ;;  %v1076_v46 = vadd.f32 %v2699_v44, %v972_v42  ;;  %1179 = vrot.lane.b32.xlu1 %v3557_v37, %s2925_s27 }
 0x1a8   : > { %v1069_v63 = vpop.f32.mrf.mxu0  ;;  %v1701_v14 = vpop.f32.mrf.mxu1 }
 0x1a9   : > { %v3562_v26 = vadd.f32 %v2715_v43, %v1076_v46  ;;  %v1070_v15 = vadd.f32 %v1069_v63, %v964_v59  ;;  %1177 = vrot.lane.b32.xlu0 %v3559_v53, %s2925_s27 }
 0x1ab   : > { %v3565_v40 = vadd.f32 %v1163_v39, %v1070_v15  ;;  %1183 = vrot.lane.b32.xlu1 %v3562_v26, %s2925_s27 }
 0x1ad   : > { %1181 = vrot.lane.b32.xlu0 %v3565_v40, %s2925_s27 }
 0x1ae   : > { %v2724_v19 = vpop.f32.mrf.mxu0 }
 0x1af   : > { %v1708_v8 = vadd.f32 %v2742_v4, %v2724_v19 }
 0x1b0   : > { %v1545_v27 = vpop.f32.mrf.mxu0 }
 0x1b1   : > { %v1702_v12 = vadd.f32 %v1701_v14, %v1545_v27 }
 0x1ba   : > { %v2745_v51 = vpop.f32.mrf.mxu1 }
 0x1bc   : > { %v1713_v47 = vpop.f32.mrf.mxu1 }
 0x1c2   : > { %v2727_v20 = vpop.f32.mrf.mxu0 }
 0x1c3   : > { %v1720_v25 = vadd.f32 %v2745_v51, %v2727_v20 }
 0x1c4   : > { %v1565_v49 = vpop.f32.mrf.mxu0 }
 0x1c5   : > { %v1714_v10 = vadd.f32 %v1713_v47, %v1565_v49 }
 0x1ce   : > { %v2748_v48 = vpop.f32.mrf.mxu1 }
 0x1d0   : > { %v1725_v55 = vpop.f32.mrf.mxu1 }
 0x1d6   : > { %v2730_v56 = vpop.f32.mrf.mxu0 }
 0x1d7   : > { %v1732_v57 = vadd.f32 %v2748_v48, %v2730_v56 }
 0x1d8   : > { %v1585_v61 = vpop.f32.mrf.mxu0 }
 0x1d9   : > { %v1726_v33 = vadd.f32 %v1725_v55, %v1585_v61 }
 0x1db   : > { %v2751_v21 = vpop.f32.mrf.mxu1 }
 0x1dd   : > { %v1737_v58 = vpop.f32.mrf.mxu1 }
 0x1df   : > { %v2778_v18 = vpop.f32.mrf.mxu1 }
 0x1e1   : > { %v1946_v54 = vpop.f32.mrf.mxu1 }
 0x1e3   : > { %v2733_v24 = vpop.f32.mrf.mxu0  ;;  %v2781_v0 = vpop.f32.mrf.mxu1 }
 0x1e4   : > { %v1744_v46 = vadd.f32 %v2751_v21, %v2733_v24 }
 0x1e5   : > { %v1605_v6 = vpop.f32.mrf.mxu0  ;;  %v1962_v29 = vpop.f32.mrf.mxu1 }
 0x1e6   : > { %v1738_v19 = vadd.f32 %v1737_v58, %v1605_v6 }
 0x1e7   : > { %v2760_v9 = vpop.f32.mrf.mxu0  ;;  %v2784_v35 = vpop.f32.mrf.mxu1 }
 0x1e8   : > { %v1829_v2 = vadd.f32 %v2760_v9, %v1708_v8 }
 0x1e9   : > { %v1821_v41 = vpop.f32.mrf.mxu0  ;;  %v1978_v11 = vpop.f32.mrf.mxu1 }
 0x1ea   : > { %v1822_v7 = vadd.f32 %v1821_v41, %v1702_v12  ;;  %v1955_v30 = vadd.f32 %v2778_v18, %v1829_v2 }
 0x1eb   : > { %v2763_v28 = vpop.f32.mrf.mxu0  ;;  %v3569_v5 = vpop.f32.mrf.mxu1 }
 0x1ec   : > { %v1843_v3 = vadd.f32 %v2763_v28, %v1720_v25  ;;  %v1947_v32 = vadd.f32 %v1946_v54, %v1822_v7 }
 0x1ed   : > { %v1835_v52 = vpop.f32.mrf.mxu0  ;;  %v3571_v60 = vpop.f32.mrf.mxu1 }
 0x1ee   : > { %v1836_v22 = vadd.f32 %v1835_v52, %v1714_v10  ;;  %v1971_v44 = vadd.f32 %v2781_v0, %v1843_v3 }
 0x1ef   : > { %v2766_v23 = vpop.f32.mrf.mxu0  ;;  %v2814_v34 = vpop.f32.mrf.mxu1 }
 0x1f0   : > { %v1857_v36 = vadd.f32 %v2766_v23, %v1732_v57  ;;  %v1963_v51 = vadd.f32 %v1962_v29, %v1836_v22 }
 0x1f1   : > { %v1849_v1 = vpop.f32.mrf.mxu0  ;;  %v2198_v45 = vpop.f32.mrf.mxu1 }
 0x1f2   : > { %v1850_v59 = vadd.f32 %v1849_v1, %v1726_v33  ;;  %v1987_v27 = vadd.f32 %v2784_v35, %v1857_v36 }
 0x1f3   : > { %v2769_v31 = vpop.f32.mrf.mxu0  ;;  %v2817_v16 = vpop.f32.mrf.mxu1 }
 0x1f4   : > { %v1871_v48 = vadd.f32 %v2769_v31, %v1744_v46  ;;  %v1979_v18 = vadd.f32 %v1978_v11, %v1850_v59 }
 0x1f5   : > { %v1863_v50 = vpop.f32.mrf.mxu0  ;;  %v2210_v17 = vpop.f32.mrf.mxu1 }
 0x1f6   : > { %v1864_v61 = vadd.f32 %v1863_v50, %v1738_v19  ;;  %v2003_v9 = vadd.f32 %v3569_v5, %v1871_v48 }
 0x1f7   : > { %v2796_v13 = vpop.f32.mrf.mxu0  ;;  %v2820_v63 = vpop.f32.mrf.mxu1 }
 0x1f8   : > { %v2089_v62 = vadd.f32 %v2796_v13, %v1955_v30  ;;  %v1995_v23 = vadd.f32 %v3571_v60, %v1864_v61 }
 0x1f9   : > { %v2082_v38 = vpop.f32.mrf.mxu0  ;;  %v2222_v21 = vpop.f32.mrf.mxu1 }
 0x1fa   : > { %v2205_v42 = vadd.f32 %v2814_v34, %v2089_v62  ;;  %v2083_v43 = vadd.f32 %v2082_v38, %v1947_v32 }
 0x1fb   : > { %v2799_v15 = vpop.f32.mrf.mxu0  ;;  %v2823_v35 = vpop.f32.mrf.mxu1 }
 0x1fc   : > { %v2245_v39 = vadd.f32 %v2205_v42, %v3559_v53  ;;  %v2199_v4 = vadd.f32 %v2198_v45, %v2083_v43  ;;  %v2101_v14 = vadd.f32 %v2799_v15, %v1971_v44 }
 0x1fd   : > { %v2094_v47 = vpop.f32.mrf.mxu0  ;;  %v2234_v1 = vpop.f32.mrf.mxu1 }
 0x1fe   : > { %2253 = vst.msk [vmem:[%s3578_s14 + $0x8] sm:$0xff] %vm484_vm1, %v2245_v39  ;;  %v2244_v20 = vadd.f32 %v2199_v4, %v3559_v53  ;;  %v2217_v55 = vadd.f32 %v2817_v16, %v2101_v14  ;;  %v2095_v49 = vadd.f32 %v2094_v47, %v1963_v51 }
 0x1ff   : > { %v2802_v56 = vpop.f32.mrf.mxu0 }
 0x200   : > { %2252 = vst.msk [vmem:[%s3578_s14] sm:$0xff] %vm484_vm1, %v2244_v20  ;;  %v2247_v54 = vadd.f32 %v2217_v55, %v3557_v37  ;;  %v2211_v58 = vadd.f32 %v2210_v17, %v2095_v49  ;;  %v2113_v24 = vadd.f32 %v2802_v56, %v1987_v27 }
 0x201   : > { %v2106_v0 = vpop.f32.mrf.mxu0 }
 0x202   : > { %2255 = vst.msk [vmem:[%s3578_s14 + $0x18] sm:$0xff] %vm484_vm1, %v2247_v54  ;;  %v2246_v6 = vadd.f32 %v2211_v58, %v3557_v37  ;;  %v2229_v53 = vadd.f32 %v2820_v63, %v2113_v24  ;;  %v2107_v29 = vadd.f32 %v2106_v0, %v1979_v18 }
 0x203   : > { %v2805_v41 = vpop.f32.mrf.mxu0 }
 0x204   : > { %2254 = vst.msk [vmem:[%s3578_s14 + $0x10] sm:$0xff] %vm484_vm1, %v2246_v6  ;;  %v2249_v11 = vadd.f32 %v2229_v53, %v3565_v40  ;;  %v2223_v28 = vadd.f32 %v2222_v21, %v2107_v29  ;;  %v2125_v52 = vadd.f32 %v2805_v41, %v2003_v9 }
 0x205   : > { %v2118_v37 = vpop.f32.mrf.mxu0 }
 0x206   : > { %2257 = vst.msk [vmem:[%s3578_s14 + $0x28] sm:$0xff] %vm484_vm1, %v2249_v11  ;;  %v2248_v34 = vadd.f32 %v2223_v28, %v3565_v40  ;;  %v2241_v5 = vadd.f32 %v2823_v35, %v2125_v52  ;;  %v2119_v8 = vadd.f32 %v2118_v37, %v1995_v23 }
 0x208   : > { %2256 = vst.msk [vmem:[%s3578_s14 + $0x20] sm:$0xff] %vm484_vm1, %v2248_v34  ;;  %v2251_v45 = vadd.f32 %v2241_v5, %v3562_v26  ;;  %v2235_v12 = vadd.f32 %v2234_v1, %v2119_v8 }
 0x20a   : > { %2259 = vst.msk [vmem:[%s3578_s14 + $0x38] sm:$0xff] %vm484_vm1, %v2251_v45  ;;  %v2250_v2 = vadd.f32 %v2235_v12, %v3562_v26 }
 0x20c   : > { %2258 = vst.msk [vmem:[%s3578_s14 + $0x30] sm:$0xff] %vm484_vm1, %v2250_v2 }
 0x219   : > { %v1180_v40 = vpop.permute.xlu1 %1179 }
 0x21a   : > { %1191 = vst.msk [vmem:[%s317_s8 + $0x8] sm:$0xff] %vm1189_vm10, %v1180_v40 }
 0x21b   : > { %v1178_v60 = vpop.permute.xlu0 %1177 }
 0x21c   : > { %1190 = vst.msk [vmem:[%s317_s8] sm:$0xff] %vm1189_vm10, %v1178_v60 }
 0x21d   : > { %v1184_v31 = vpop.permute.xlu1 %1183 }
 0x21e   : > { %1193 = vst.msk [vmem:[%s317_s8 + $0x18] sm:$0xff] %vm1189_vm10, %v1184_v31 }
 0x21f   : > { %v1182_v16 = vpop.permute.xlu0 %1181 }
 0x220   : > { %1192 = vst.msk [vmem:[%s317_s8 + $0x10] sm:$0xff] %vm1189_vm10, %v1182_v16 }
 0x221 PF: > { %s16_s22 = sadd.s32 1, %s2915_s22   ;;  %s3632_s18 = smov %s2907_s20 }
 0x222   : > { %p13_p7 = scmp.ge.s32.totalorder %s16_s22, 6   ;;  %s3633_s19 = smov %s2911_s21 }
 0x223   : > { %s3634_s20 = smov %s3637_s23  ;;  %s3635_s21 = smov %s3641_s24 }
 0x224   :  { %15 = sbr.rel (!%p13_p7) target bundleno = 3 (0x3), region = 85 }

</bundles_post_ra>
